<compile_context>
chip_gen: v6e
topology: v6e:2x2x1
jax: 0.10.0
libtpu: 0.0.40
codegen_flags: <defaults>
</compile_context>

<pallas_src>
import functools

import jax
import jax.numpy as jnp
from jax.experimental import pallas as pl
from jax.experimental.pallas import tpu as pltpu

_LANE = 128


def _round_up(n: int, m: int) -> int:
    return ((n + m - 1) // m) * m


def _resnet1d_kernel(x_ref, g_ref, beta_ref,
                     wi_ref, bi_ref,
                     w1_ref, b1_ref,
                     w2_ref, b2_ref,
                     w3_ref, b3_ref,
                     wo_ref, bo_ref,
                     o_ref, *, eps: float, in_dim: int):
    """One (tm, feature) row-tile of the fused ResNet1d forward.

    Feature axes are zero-padded to multiples of 128 by the wrapper, so all
    vreg lanes / MXU columns are used and the output store is unmasked.
    LayerNorm statistics use only the first `in_dim` (un-padded) lanes.
    """
    x = x_ref[...].astype(jnp.float32)

    # ---- LayerNorm over last dim (biased variance, like torch.nn.LayerNorm) ----
    inv_n = 1.0 / in_dim
    mean = jnp.sum(x, axis=-1, keepdims=True) * inv_n          # padded lanes are zero
    centered = x - mean
    if in_dim != x.shape[-1]:
        col = jax.lax.broadcasted_iota(jnp.int32, x.shape, 1)
        centered = jnp.where(col < in_dim, centered, 0.0)      # mask padded lanes
    var = jnp.sum(centered * centered, axis=-1, keepdims=True) * inv_n
    xn = centered * jax.lax.rsqrt(var + eps)
    xn = xn * g_ref[...] + beta_ref[...]

    # ---- linear_in (bf16 MXU inputs, f32 accumulate) ----
    h = jnp.dot(xn.astype(jnp.bfloat16), wi_ref[...],
                preferred_element_type=jnp.float32) + bi_ref[...]

    # ---- 3 residual blocks: h = h + relu(h @ W + b) ----
    for w_r, b_r in ((w1_ref, b1_ref), (w2_ref, b2_ref), (w3_ref, b3_ref)):
        y = jnp.dot(h.astype(jnp.bfloat16), w_r[...],
                    preferred_element_type=jnp.float32) + b_r[...]
        h = h + jnp.maximum(y, 0.0)

    # ---- linear_out ----
    out = jnp.dot(h.astype(jnp.bfloat16), wo_ref[...],
                  preferred_element_type=jnp.float32) + bo_ref[...]
    o_ref[...] = out.astype(o_ref.dtype)


def _pad2(a, rows, cols):
    return jnp.pad(a, ((0, rows - a.shape[0]), (0, cols - a.shape[1])))


def resnet1d_pallas(x, params, *, tm: int = 256, eps: float = 1e-5):
    """x: (..., in_dim) -> (..., out_dim). Leading dims flattened into rows."""
    (g, beta, w_in, b_in, w1, b1, w2, b2, w3, b3, w_out, b_out) = params
    in_dim = x.shape[-1]
    hidden = w_in.shape[1]
    out_dim = w_out.shape[1]
    lead = x.shape[:-1]

    x2d = x.reshape(-1, in_dim)
    M = x2d.shape[0]
    assert tm % 8 == 0, "row tile must be a multiple of 8 (f32 sublanes)"

    # Lane-dense padding: every feature axis -> multiple of 128 lanes.
    in_p = _round_up(in_dim, _LANE)
    hid_p = _round_up(hidden, _LANE)
    out_p = _round_up(out_dim, _LANE)
    # Row padding so any M works (no divisibility assert); grid = m_p // tm.
    m_p = _round_up(max(M, tm), tm)

    f32, bf16 = jnp.float32, jnp.bfloat16

    x_p = _pad2(x2d.astype(f32), m_p, in_p)
    g_p = _pad2(g.astype(f32), 1, in_p)
    beta_p = _pad2(beta.astype(f32), 1, in_p)
    # Weights stored (in, out), zero-padded, pre-cast to bf16 once (halves
    # DMA / vreg traffic; matmuls still accumulate in f32). Biases stay f32.
    wi_p = _pad2(w_in, in_p, hid_p).astype(bf16)
    bi_p = _pad2(b_in.astype(f32), 1, hid_p)
    w1_p = _pad2(w1, hid_p, hid_p).astype(bf16)
    b1_p = _pad2(b1.astype(f32), 1, hid_p)
    w2_p = _pad2(w2, hid_p, hid_p).astype(bf16)
    b2_p = _pad2(b2.astype(f32), 1, hid_p)
    w3_p = _pad2(w3, hid_p, hid_p).astype(bf16)
    b3_p = _pad2(b3.astype(f32), 1, hid_p)
    wo_p = _pad2(w_out, hid_p, out_p).astype(bf16)
    bo_p = _pad2(b_out.astype(f32), 1, out_p)

    # Constant index_map => blocks stay resident in VMEM across grid steps.
    # NOTE: at realistic hidden dims (512+) on v7x (64 MiB VMEM) add
    # pipeline_mode=pl.Buffered(1) to the weight specs to avoid double-buffering
    # invariant weights; irrelevant at these padded demo sizes.
    def const_spec(shape):
        return pl.BlockSpec(shape, lambda i: (0, 0))

    grid_spec = pltpu.PrefetchScalarGridSpec(
        num_scalar_prefetch=0,
        grid=(m_p // tm,),
        in_specs=[
            pl.BlockSpec((tm, in_p), lambda i: (i, 0)),          # x rows
            const_spec((1, in_p)),                               # ln gamma
            const_spec((1, in_p)),                               # ln beta
            const_spec((in_p, hid_p)),                           # W_in
            const_spec((1, hid_p)),                              # b_in
            const_spec((hid_p, hid_p)), const_spec((1, hid_p)),  # block 1
            const_spec((hid_p, hid_p)), const_spec((1, hid_p)),  # block 2
            const_spec((hid_p, hid_p)), const_spec((1, hid_p)),  # block 3
            const_spec((hid_p, out_p)),                          # W_out
            const_spec((1, out_p)),                              # b_out
        ],
        out_specs=pl.BlockSpec((tm, out_p), lambda i: (i, 0)),   # lane-dense store
    )

    flops = 2 * m_p * (in_p * hid_p + 3 * hid_p * hid_p + hid_p * out_p)
    bytes_accessed = int(
        x_p.size * 4 + m_p * out_p * 4
        + (wi_p.size + w1_p.size + w2_p.size + w3_p.size + wo_p.size) * 2
        + (bi_p.size + b1_p.size + b2_p.size + b3_p.size + bo_p.size
           + g_p.size + beta_p.size) * 4)
    cost = pl.CostEstimate(flops=flops, transcendentals=m_p,
                           bytes_accessed=bytes_accessed)

    out2d = pl.pallas_call(
        functools.partial(_resnet1d_kernel, eps=eps, in_dim=in_dim),
        out_shape=jax.ShapeDtypeStruct((m_p, out_p), x.dtype),
        grid_spec=grid_spec,
        compiler_params=pltpu.CompilerParams(
            dimension_semantics=("parallel",),        # megacore sharding on v7x
            vmem_limit_bytes=48 * 1024 * 1024),       # > default scoped limit, < v7x physical
        cost_estimate=cost,
    )(x_p, g_p, beta_p, wi_p, bi_p,
      w1_p, b1_p, w2_p, b2_p, w3_p, b3_p, wo_p, bo_p)

    return out2d[:M, :out_dim].reshape(*lead, out_dim)


def init_params(key, in_dim, hidden_dim, out_dim, nblock=3):
    """Deterministic synthetic parameters (weights stored as (in, out))."""
    keys = jax.random.split(key, 2 + nblock)
    k = iter(keys)

    def linear(kk, fan_in, fan_out):
        bound = 1.0 / (fan_in ** 0.5)
        w = jax.random.uniform(kk, (fan_in, fan_out), jnp.float32, -bound, bound)
        b = jax.random.uniform(jax.random.fold_in(kk, 1), (1, fan_out),
                               jnp.float32, -bound, bound)
        return w, b

    g = jnp.ones((1, in_dim), jnp.float32)
    beta = jnp.zeros((1, in_dim), jnp.float32)
    w_in, b_in = linear(next(k), in_dim, hidden_dim)
    blocks = [linear(next(k), hidden_dim, hidden_dim) for _ in range(nblock)]
    w_out, b_out = linear(next(k), hidden_dim, out_dim)

    params = [g, beta, w_in, b_in]
    for w, b in blocks:
        params += [w, b]
    params += [w_out, b_out]
    return tuple(params)


def resnet1d_ref(x, params, eps=1e-5):
    """Pure-JAX reference mirroring the kernel's bf16-matmul / f32-accumulate math."""
    (g, beta, w_in, b_in, w1, b1, w2, b2, w3, b3, w_out, b_out) = params
    x = x.astype(jnp.float32)
    mean = jnp.mean(x, axis=-1, keepdims=True)
    var = jnp.mean((x - mean) ** 2, axis=-1, keepdims=True)
    xn = (x - mean) * jax.lax.rsqrt(var + eps) * g[0] + beta[0]

    def mm(a, w):
        return jnp.dot(a.astype(jnp.bfloat16), w.astype(jnp.bfloat16),
                       preferred_element_type=jnp.float32)

    h = mm(xn, w_in) + b_in[0]
    for w, b in ((w1, b1), (w2, b2), (w3, b3)):
        h = h + jax.nn.relu(mm(h, w) + b[0])
    return mm(h, w_out) + b_out[0]


if __name__ == "__main__":
    in_dim, hidden_dim, out_dim = 16, 32, 8
    batch, seq = 4, 128   # M = 512 rows -> 2 grid steps at tm=256 (both v7x TCs busy)

    key = jax.random.PRNGKey(0)
    kx, kp = jax.random.split(key)
    x = jax.random.normal(kx, (batch, seq, in_dim), jnp.float32)
    params = init_params(kp, in_dim, hidden_dim, out_dim, nblock=3)

    out = resnet1d_pallas(x, params, tm=256)
    out = jax.block_until_ready(out)

    ref = resnet1d_ref(x, params)
    assert out.shape == (batch, seq, out_dim)
    max_err = float(jnp.max(jnp.abs(out - ref)))
    assert jnp.allclose(out, ref, atol=1e-2, rtol=1e-2), \
        f"mismatch vs JAX reference (max abs err {max_err})"

    print("KERNEL_OK")
</pallas_src>

<mosaic_0001>
module attributes {stable_mosaic.version = 11 : i64} {
  func.func @_resnet1d_kernel(%arg0: i32, %arg1: memref<256x128xf32, #tpu.memory_space<vmem>>, %arg2: memref<1x128xf32, #tpu.memory_space<vmem>>, %arg3: memref<1x128xf32, #tpu.memory_space<vmem>>, %arg4: memref<128x128xbf16, #tpu.memory_space<vmem>>, %arg5: memref<1x128xf32, #tpu.memory_space<vmem>>, %arg6: memref<128x128xbf16, #tpu.memory_space<vmem>>, %arg7: memref<1x128xf32, #tpu.memory_space<vmem>>, %arg8: memref<128x128xbf16, #tpu.memory_space<vmem>>, %arg9: memref<1x128xf32, #tpu.memory_space<vmem>>, %arg10: memref<128x128xbf16, #tpu.memory_space<vmem>>, %arg11: memref<1x128xf32, #tpu.memory_space<vmem>>, %arg12: memref<128x128xbf16, #tpu.memory_space<vmem>>, %arg13: memref<1x128xf32, #tpu.memory_space<vmem>>, %arg14: memref<256x128xf32, #tpu.memory_space<vmem>>) attributes {dimension_semantics = [#tpu.dimension_semantics<parallel>], iteration_bounds = array<i64: 2>, scalar_prefetch = 0 : i64, scratch_operands = 0 : i64, tpu.core_type = #tpu.core_type<tc>, window_params = [{transform_indices = @transform_0, window_bounds = array<i64: 256, 128>}, {pipeline_mode = #tpu.pipeline_mode<synchronous>, transform_indices = @transform_1, window_bounds = array<i64: 1, 128>}, {pipeline_mode = #tpu.pipeline_mode<synchronous>, transform_indices = @transform_2, window_bounds = array<i64: 1, 128>}, {pipeline_mode = #tpu.pipeline_mode<synchronous>, transform_indices = @transform_3, window_bounds = array<i64: 128, 128>}, {pipeline_mode = #tpu.pipeline_mode<synchronous>, transform_indices = @transform_4, window_bounds = array<i64: 1, 128>}, {pipeline_mode = #tpu.pipeline_mode<synchronous>, transform_indices = @transform_5, window_bounds = array<i64: 128, 128>}, {pipeline_mode = #tpu.pipeline_mode<synchronous>, transform_indices = @transform_6, window_bounds = array<i64: 1, 128>}, {pipeline_mode = #tpu.pipeline_mode<synchronous>, transform_indices = @transform_7, window_bounds = array<i64: 128, 128>}, {pipeline_mode = #tpu.pipeline_mode<synchronous>, transform_indices = @transform_8, window_bounds = array<i64: 1, 128>}, {pipeline_mode = #tpu.pipeline_mode<synchronous>, transform_indices = @transform_9, window_bounds = array<i64: 128, 128>}, {pipeline_mode = #tpu.pipeline_mode<synchronous>, transform_indices = @transform_10, window_bounds = array<i64: 1, 128>}, {pipeline_mode = #tpu.pipeline_mode<synchronous>, transform_indices = @transform_11, window_bounds = array<i64: 128, 128>}, {pipeline_mode = #tpu.pipeline_mode<synchronous>, transform_indices = @transform_12, window_bounds = array<i64: 1, 128>}, {transform_indices = @transform_13, window_bounds = array<i64: 256, 128>}]} {
    %c0 = arith.constant 0 : index
    %c0_0 = arith.constant 0 : index
    %0 = vector.load %arg1[%c0, %c0_0] : memref<256x128xf32, #tpu.memory_space<vmem>>, vector<256x128xf32>
    %cst = arith.constant dense<0.000000e+00> : vector<256xf32>
    %1 = vector.multi_reduction <add>, %0, %cst [1] : vector<256x128xf32> to vector<256xf32>
    %2 = vector.shape_cast %1 : vector<256xf32> to vector<256x1xf32>
    %cst_1 = arith.constant 6.250000e-02 : f32
    %3 = vector.broadcast %cst_1 : f32 to vector<256x1xf32>
    %4 = arith.mulf %2, %3 : vector<256x1xf32>
    %5 = vector.broadcast %4 : vector<256x1xf32> to vector<256x128xf32>
    %6 = arith.subf %0, %5 : vector<256x128xf32>
    %7 = tpu.iota {dimensions = array<i32: 1>} : vector<256x128xi32>
    %c16_i32 = arith.constant 16 : i32
    %8 = vector.broadcast %c16_i32 : i32 to vector<256x128xi32>
    %9 = arith.cmpi slt, %7, %8 : vector<256x128xi32>
    %cst_2 = arith.constant 0.000000e+00 : f32
    %10 = vector.broadcast %cst_2 : f32 to vector<256x128xf32>
    %11 = arith.select %9, %6, %10 : vector<256x128xi1>, vector<256x128xf32>
    %12 = arith.mulf %11, %11 : vector<256x128xf32>
    %cst_3 = arith.constant dense<0.000000e+00> : vector<256xf32>
    %13 = vector.multi_reduction <add>, %12, %cst_3 [1] : vector<256x128xf32> to vector<256xf32>
    %14 = vector.shape_cast %13 : vector<256xf32> to vector<256x1xf32>
    %cst_4 = arith.constant 6.250000e-02 : f32
    %15 = vector.broadcast %cst_4 : f32 to vector<256x1xf32>
    %16 = arith.mulf %14, %15 : vector<256x1xf32>
    %cst_5 = arith.constant 9.99999974E-6 : f32
    %17 = vector.broadcast %cst_5 : f32 to vector<256x1xf32>
    %18 = arith.addf %16, %17 : vector<256x1xf32>
    %19 = math.rsqrt %18 : vector<256x1xf32>
    %20 = vector.broadcast %19 : vector<256x1xf32> to vector<256x128xf32>
    %21 = arith.mulf %11, %20 : vector<256x128xf32>
    %c0_6 = arith.constant 0 : index
    %c0_7 = arith.constant 0 : index
    %22 = vector.load %arg2[%c0_6, %c0_7] : memref<1x128xf32, #tpu.memory_space<vmem>>, vector<1x128xf32>
    %23 = vector.broadcast %22 : vector<1x128xf32> to vector<256x128xf32>
    %24 = arith.mulf %21, %23 : vector<256x128xf32>
    %c0_8 = arith.constant 0 : index
    %c0_9 = arith.constant 0 : index
    %25 = vector.load %arg3[%c0_8, %c0_9] : memref<1x128xf32, #tpu.memory_space<vmem>>, vector<1x128xf32>
    %26 = vector.broadcast %25 : vector<1x128xf32> to vector<256x128xf32>
    %27 = arith.addf %24, %26 : vector<256x128xf32>
    %28 = arith.truncf %27 : vector<256x128xf32> to vector<256x128xbf16>
    %c0_10 = arith.constant 0 : index
    %c0_11 = arith.constant 0 : index
    %29 = vector.load %arg4[%c0_10, %c0_11] : memref<128x128xbf16, #tpu.memory_space<vmem>>, vector<128x128xbf16>
    %cst_12 = arith.constant dense<0.000000e+00> : vector<256x128xf32>
    %30 = tpu.matmul %28, %29, %cst_12 {dimension_numbers = #tpu.dot_dimension_numbers<[1], [0], [0], [1], [0, 0, 1, 1], [], []>} : vector<256x128xbf16>, vector<128x128xbf16>, vector<256x128xf32> -> vector<256x128xf32>
    %c0_13 = arith.constant 0 : index
    %c0_14 = arith.constant 0 : index
    %31 = vector.load %arg5[%c0_13, %c0_14] : memref<1x128xf32, #tpu.memory_space<vmem>>, vector<1x128xf32>
    %32 = vector.broadcast %31 : vector<1x128xf32> to vector<256x128xf32>
    %33 = arith.addf %30, %32 : vector<256x128xf32>
    %34 = arith.truncf %33 : vector<256x128xf32> to vector<256x128xbf16>
    %c0_15 = arith.constant 0 : index
    %c0_16 = arith.constant 0 : index
    %35 = vector.load %arg6[%c0_15, %c0_16] : memref<128x128xbf16, #tpu.memory_space<vmem>>, vector<128x128xbf16>
    %cst_17 = arith.constant dense<0.000000e+00> : vector<256x128xf32>
    %36 = tpu.matmul %34, %35, %cst_17 {dimension_numbers = #tpu.dot_dimension_numbers<[1], [0], [0], [1], [0, 0, 1, 1], [], []>} : vector<256x128xbf16>, vector<128x128xbf16>, vector<256x128xf32> -> vector<256x128xf32>
    %c0_18 = arith.constant 0 : index
    %c0_19 = arith.constant 0 : index
    %37 = vector.load %arg7[%c0_18, %c0_19] : memref<1x128xf32, #tpu.memory_space<vmem>>, vector<1x128xf32>
    %38 = vector.broadcast %37 : vector<1x128xf32> to vector<256x128xf32>
    %39 = arith.addf %36, %38 : vector<256x128xf32>
    %cst_20 = arith.constant 0.000000e+00 : f32
    %40 = vector.broadcast %cst_20 : f32 to vector<256x128xf32>
    %41 = arith.maximumf %39, %40 : vector<256x128xf32>
    %42 = arith.addf %33, %41 : vector<256x128xf32>
    %43 = arith.truncf %42 : vector<256x128xf32> to vector<256x128xbf16>
    %c0_21 = arith.constant 0 : index
    %c0_22 = arith.constant 0 : index
    %44 = vector.load %arg8[%c0_21, %c0_22] : memref<128x128xbf16, #tpu.memory_space<vmem>>, vector<128x128xbf16>
    %cst_23 = arith.constant dense<0.000000e+00> : vector<256x128xf32>
    %45 = tpu.matmul %43, %44, %cst_23 {dimension_numbers = #tpu.dot_dimension_numbers<[1], [0], [0], [1], [0, 0, 1, 1], [], []>} : vector<256x128xbf16>, vector<128x128xbf16>, vector<256x128xf32> -> vector<256x128xf32>
    %c0_24 = arith.constant 0 : index
    %c0_25 = arith.constant 0 : index
    %46 = vector.load %arg9[%c0_24, %c0_25] : memref<1x128xf32, #tpu.memory_space<vmem>>, vector<1x128xf32>
    %47 = vector.broadcast %46 : vector<1x128xf32> to vector<256x128xf32>
    %48 = arith.addf %45, %47 : vector<256x128xf32>
    %cst_26 = arith.constant 0.000000e+00 : f32
    %49 = vector.broadcast %cst_26 : f32 to vector<256x128xf32>
    %50 = arith.maximumf %48, %49 : vector<256x128xf32>
    %51 = arith.addf %42, %50 : vector<256x128xf32>
    %52 = arith.truncf %51 : vector<256x128xf32> to vector<256x128xbf16>
    %c0_27 = arith.constant 0 : index
    %c0_28 = arith.constant 0 : index
    %53 = vector.load %arg10[%c0_27, %c0_28] : memref<128x128xbf16, #tpu.memory_space<vmem>>, vector<128x128xbf16>
    %cst_29 = arith.constant dense<0.000000e+00> : vector<256x128xf32>
    %54 = tpu.matmul %52, %53, %cst_29 {dimension_numbers = #tpu.dot_dimension_numbers<[1], [0], [0], [1], [0, 0, 1, 1], [], []>} : vector<256x128xbf16>, vector<128x128xbf16>, vector<256x128xf32> -> vector<256x128xf32>
    %c0_30 = arith.constant 0 : index
    %c0_31 = arith.constant 0 : index
    %55 = vector.load %arg11[%c0_30, %c0_31] : memref<1x128xf32, #tpu.memory_space<vmem>>, vector<1x128xf32>
    %56 = vector.broadcast %55 : vector<1x128xf32> to vector<256x128xf32>
    %57 = arith.addf %54, %56 : vector<256x128xf32>
    %cst_32 = arith.constant 0.000000e+00 : f32
    %58 = vector.broadcast %cst_32 : f32 to vector<256x128xf32>
    %59 = arith.maximumf %57, %58 : vector<256x128xf32>
    %60 = arith.addf %51, %59 : vector<256x128xf32>
    %61 = arith.truncf %60 : vector<256x128xf32> to vector<256x128xbf16>
    %c0_33 = arith.constant 0 : index
    %c0_34 = arith.constant 0 : index
    %62 = vector.load %arg12[%c0_33, %c0_34] : memref<128x128xbf16, #tpu.memory_space<vmem>>, vector<128x128xbf16>
    %cst_35 = arith.constant dense<0.000000e+00> : vector<256x128xf32>
    %63 = tpu.matmul %61, %62, %cst_35 {dimension_numbers = #tpu.dot_dimension_numbers<[1], [0], [0], [1], [0, 0, 1, 1], [], []>} : vector<256x128xbf16>, vector<128x128xbf16>, vector<256x128xf32> -> vector<256x128xf32>
    %c0_36 = arith.constant 0 : index
    %c0_37 = arith.constant 0 : index
    %64 = vector.load %arg13[%c0_36, %c0_37] : memref<1x128xf32, #tpu.memory_space<vmem>>, vector<1x128xf32>
    %65 = vector.broadcast %64 : vector<1x128xf32> to vector<256x128xf32>
    %66 = arith.addf %63, %65 : vector<256x128xf32>
    %c0_38 = arith.constant 0 : index
    %c0_39 = arith.constant 0 : index
    %67 = vector.load %arg14[%c0_38, %c0_39] : memref<256x128xf32, #tpu.memory_space<vmem>>, vector<256x128xf32>
    tpu.vector_store %arg14[%c0_38, %c0_39], %66 {strides = array<i32>} : memref<256x128xf32, #tpu.memory_space<vmem>>, vector<256x128xf32>,
    return
  }
  func.func @transform_0(%arg0: i32) -> (i32, i32) {
    %c0_i32 = arith.constant 0 : i32
    %c0_i32_0 = arith.constant 0 : i32
    return %arg0, %c0_i32 : i32, i32
  }
  func.func @transform_1(%arg0: i32) -> (i32, i32) {
    %c0_i32 = arith.constant 0 : i32
    %c0_i32_0 = arith.constant 0 : i32
    %c0_i32_1 = arith.constant 0 : i32
    return %c0_i32, %c0_i32_0 : i32, i32
  }
  func.func @transform_2(%arg0: i32) -> (i32, i32) {
    %c0_i32 = arith.constant 0 : i32
    %c0_i32_0 = arith.constant 0 : i32
    %c0_i32_1 = arith.constant 0 : i32
    return %c0_i32, %c0_i32_0 : i32, i32
  }
  func.func @transform_3(%arg0: i32) -> (i32, i32) {
    %c0_i32 = arith.constant 0 : i32
    %c0_i32_0 = arith.constant 0 : i32
    %c0_i32_1 = arith.constant 0 : i32
    return %c0_i32, %c0_i32_0 : i32, i32
  }
  func.func @transform_4(%arg0: i32) -> (i32, i32) {
    %c0_i32 = arith.constant 0 : i32
    %c0_i32_0 = arith.constant 0 : i32
    %c0_i32_1 = arith.constant 0 : i32
    return %c0_i32, %c0_i32_0 : i32, i32
  }
  func.func @transform_5(%arg0: i32) -> (i32, i32) {
    %c0_i32 = arith.constant 0 : i32
    %c0_i32_0 = arith.constant 0 : i32
    %c0_i32_1 = arith.constant 0 : i32
    return %c0_i32, %c0_i32_0 : i32, i32
  }
  func.func @transform_6(%arg0: i32) -> (i32, i32) {
    %c0_i32 = arith.constant 0 : i32
    %c0_i32_0 = arith.constant 0 : i32
    %c0_i32_1 = arith.constant 0 : i32
    return %c0_i32, %c0_i32_0 : i32, i32
  }
  func.func @transform_7(%arg0: i32) -> (i32, i32) {
    %c0_i32 = arith.constant 0 : i32
    %c0_i32_0 = arith.constant 0 : i32
    %c0_i32_1 = arith.constant 0 : i32
    return %c0_i32, %c0_i32_0 : i32, i32
  }
  func.func @transform_8(%arg0: i32) -> (i32, i32) {
    %c0_i32 = arith.constant 0 : i32
    %c0_i32_0 = arith.constant 0 : i32
    %c0_i32_1 = arith.constant 0 : i32
    return %c0_i32, %c0_i32_0 : i32, i32
  }
  func.func @transform_9(%arg0: i32) -> (i32, i32) {
    %c0_i32 = arith.constant 0 : i32
    %c0_i32_0 = arith.constant 0 : i32
    %c0_i32_1 = arith.constant 0 : i32
    return %c0_i32, %c0_i32_0 : i32, i32
  }
  func.func @transform_10(%arg0: i32) -> (i32, i32) {
    %c0_i32 = arith.constant 0 : i32
    %c0_i32_0 = arith.constant 0 : i32
    %c0_i32_1 = arith.constant 0 : i32
    return %c0_i32, %c0_i32_0 : i32, i32
  }
  func.func @transform_11(%arg0: i32) -> (i32, i32) {
    %c0_i32 = arith.constant 0 : i32
    %c0_i32_0 = arith.constant 0 : i32
    %c0_i32_1 = arith.constant 0 : i32
    return %c0_i32, %c0_i32_0 : i32, i32
  }
  func.func @transform_12(%arg0: i32) -> (i32, i32) {
    %c0_i32 = arith.constant 0 : i32
    %c0_i32_0 = arith.constant 0 : i32
    %c0_i32_1 = arith.constant 0 : i32
    return %c0_i32, %c0_i32_0 : i32, i32
  }
  func.func @transform_13(%arg0: i32) -> (i32, i32) {
    %c0_i32 = arith.constant 0 : i32
    %c0_i32_0 = arith.constant 0 : i32
    return %arg0, %c0_i32 : i32, i32
  }
}

</mosaic_0001>

<bundles_post_ra>
// kernel: tpu_custom_call.1
= control target key start
LH: loop header
LB: loop body
LE: loop exit
PB: predicated region body
PF: predicated region fallthrough
CT: control target
= control target key end

     0   :  { %s4927_s0 = inlined_call_operand.hbm [shape: f32[512,128], index: 0, kind: input, shape index: {}]   ;;  %s4928_s1 = inlined_call_operand.vmem [shape: f32[1,128], index: 1, kind: input, shape index: {}]   ;;  %s4929_s2 = inlined_call_operand.vmem [shape: f32[1,128], index: 2, kind: input, shape index: {}]   ;;  %s4930_s3 = inlined_call_operand.hbm [shape: bf16[128,128], index: 3, kind: input, shape index: {}]   ;;  %s4931_s4 = inlined_call_operand.vmem [shape: f32[1,128], index: 4, kind: input, shape index: {}]   ;;  %s4932_s5 = inlined_call_operand.hbm [shape: bf16[128,128], index: 5, kind: input, shape index: {}]   ;;  %s4933_s6 = inlined_call_operand.vmem [shape: f32[1,128], index: 6, kind: input, shape index: {}]   ;;  %s4934_s7 = inlined_call_operand.hbm [shape: bf16[128,128], index: 7, kind: input, shape index: {}]   ;;  %s4935_s8 = inlined_call_operand.vmem [shape: f32[1,128], index: 8, kind: input, shape index: {}]   ;;  %s4936_s9 = inlined_call_operand.hbm [shape: bf16[128,128], index: 9, kind: input, shape index: {}]   ;;  %s4937_s10 = inlined_call_operand.vmem [shape: f32[1,128], index: 10, kind: input, shape index: {}]   ;;  %s4938_s11 = inlined_call_operand.hbm [shape: bf16[128,128], index: 11, kind: input, shape index: {}]   ;;  %s4939_s12 = inlined_call_operand.vmem [shape: f32[1,128], index: 12, kind: input, shape index: {}]   ;;  %s4940_s13 = inlined_call_operand.hbm [shape: f32[512,128], index: 13, kind: output, shape index: {}]  }
   0x1   :  { %4946 = sst [smem:[#allocation21_spill]] %s4930_s3 }
   0x2   :  { %4947 = sst [smem:[#allocation22_spill]] %s4932_s5 }
   0x3   :  { %4948 = sst [smem:[#allocation23_spill]] %s4934_s7 }
   0x4   :  { %4949 = sst [smem:[#allocation24_spill]] %s4936_s9 }
   0x5   :  { %4950 = sst [smem:[#allocation25_spill]] %s4938_s11 }
   0x6   :  { %18 = vsyncpa [#allocation3], 0 }
   0x7   :  { %20 = vsyncpa [#allocation3 + $0x1], 0 }
   0x8   :  { %21 = vsyncpa [#allocation6], 0 }
   0x9   :  { %22 = vsyncpa [#allocation9], 0 }
   0xa   :  { %23 = vsyncpa [#allocation12], 0 }
   0xb   :  { %24 = vsyncpa [#allocation4], 0 }
   0xc   :  { %26 = vsyncpa [#allocation4 + $0x1], 0  ;;  %s3606_s25 = smov 0   ;;  %s3608_s26 = smov 0  }
   0xd   :  { %s3610_s27 = smov 0   ;;  %s3612_s28 = smov 0  }
   0xe LB: > { %4951 = sst [smem:[#allocation19_spill]] %s3517_s27  ;;  %s3523_s29 = smov [#allocation5]   ;;  %s3521_s28 = sphi %s3612_s28, %s4980_s28   ;;  %s3517_s27 = sphi %s3610_s27, %s4977_s27   ;;  %s3513_s26 = sphi %s3608_s26, %s4979_s26   ;;  %s3509_s25 = sphi %s3606_s25, %s4978_s25  }
   0xf   : > { %s359_s30 = sshll.u32 %s3523_s29, 4  ;;  %s3627_s14 = sadd.s32 4294967295, %s3521_s28   ;;  %s360_s30 = int_to_ptr.vmem [resolvable:$true] %s359_s30 }
  0x10   : > { %p2632_p0 = scmp.ge.s32.totalorder %s3521_s28, 1  ;;  %p4941_p1 = scmp.eq.s32.totalorder %s3627_s14, 0 }
  0x11   : > { %p341_p2 = scmp.lt.s32.totalorder %s3521_s28, 3  ;;  %s3524_s16 = smov [#allocation8]  }
  0x12   : > { %s391_s17 = sshll.u32 %s3524_s16, 4  ;;  %s3525_s19 = smov [#allocation7]   ;;  %s3645_s17 = int_to_ptr.vmem [resolvable:$true] %s391_s17 }
  0x13   : > { %p3632_p3 = pnand %p2632_p0, %p341_p2  ;;  %s375_s20 = sshll.u32 %s3525_s19, 4  ;;  %s3647_s20 = int_to_ptr.vmem [resolvable:$true] %s375_s20 }
  0x14   : > { %s3298_s22 = scalar_lea.vmem %s360_s30, 1024  ;;  %p3306_p11 = scmp.lt.s32.totalorder %s360_s30, %s360_s30 }
  0x15   : > { %s4952_s15 = scalar_select %p3632_p3, 1, 0 }
  0x16   : > { %p3104_p5 = pneg %p3632_p3  ;;  %p3299_p8 = scmp.ne.s32.totalorder %s360_s30, %s3298_s22 }
  0x17   : > { %p3307_p12 = scmp.lt.s32.totalorder %s3298_s22, %s3298_s22 }
  0x18   : > { %p3641_p6 = pnand %p3104_p5, %p4941_p1 }
  0x19   : > { %p3308_p13 = por %p3307_p12, %p3306_p11 }
  0x1a   : > { %p3651_p7 = pneg %p3641_p6 }
  0x1c   : > { %p3301_p9 = pnand %p3299_p8, %p3651_p7 }
  0x1e   : > { %p3302_p10 = pneg %p3301_p9 }
  0x20   : > { %p3309_p0 = pnand %p3308_p13, %p3302_p10 }
  0x22   : > { %3312 = shalt.err (!%p3309_p0)
}
  0x23   : > { %s3526_s23 = smov 64   ;;  %s3527_s24 = smov 4  }
  0x24   : > { %s4955_s3 = sld [smem:[#allocation21_spill]]  ;;  %s3324_s19 = scalar_lea.vmem %s3645_s17, 1024 }
  0x25   : > { %p3325_p2 = scmp.ne.s32.totalorder %s3645_s17, %s3324_s19  ;;  %p3332_p9 = scmp.lt.s32.totalorder %s3645_s17, %s3645_s17 }
  0x26   : > { %p3333_p10 = scmp.lt.s32.totalorder %s3324_s19, %s3324_s19 }
  0x27   : > { %p3327_p5 = pnand %p3325_p2, %p3651_p7 }
  0x28   : > { %p3334_p11 = por %p3333_p10, %p3332_p9 }
  0x29   : > { %p3328_p8 = pneg %p3327_p5 }
  0x2a   : > { %3107 = dma.hbm_to_vmem [thread:$0]  (!%p3641_p6), %s4955_s3, 1024, %s360_s30, [#allocation6], %s3526_s23, %s3526_s23, %s3527_s24  }
  0x2b   : > { %p3335_p12 = pnand %p3334_p11, %p3328_p8 }
  0x2d   : > { %3338 = shalt.err (!%p3335_p12)
}
  0x2e   : > { %s4956_s7 = sld [smem:[#allocation23_spill]]  ;;  %s3350_s30 = scalar_lea.vmem %s3647_s20, 1024 }
  0x2f   : > { %p3351_p13 = scmp.ne.s32.totalorder %s3647_s20, %s3350_s30  ;;  %p3358_p5 = scmp.lt.s32.totalorder %s3647_s20, %s3647_s20 }
  0x30   : > { %p3359_p8 = scmp.lt.s32.totalorder %s3350_s30, %s3350_s30 }
  0x31   : > { %p3353_p0 = pnand %p3351_p13, %p3651_p7 }
  0x32   : > { %p3360_p9 = por %p3359_p8, %p3358_p5 }
  0x33   : > { %p3354_p2 = pneg %p3353_p0 }
  0x34   : > { %3113 = dma.hbm_to_vmem [thread:$0]  (!%p3641_p6), %s4956_s7, 1024, %s3645_s17, [#allocation9], %s3526_s23, %s3526_s23, %s3527_s24  }
  0x35   : > { %p3361_p10 = pnand %p3360_p9, %p3354_p2 }
  0x37   : > { %3364 = shalt.err (!%p3361_p10)
}
  0x38   : > { %s4957_s5 = sld [smem:[#allocation22_spill]]  ;;  %s3528_s17 = smov [#allocation10]  }
  0x39   : > { %s407_s22 = sshll.u32 %s3528_s17, 4  ;;  %s3529_s29 = smov [#allocation11]   ;;  %s408_s22 = int_to_ptr.vmem [resolvable:$true] %s407_s22 }
  0x3a   : > { %s423_s3 = sshll.u32 %s3529_s29, 4  ;;  %s3376_s30 = scalar_lea.vmem %s408_s22, 1024  ;;  %s424_s3 = int_to_ptr.vmem [resolvable:$true] %s423_s3 }
  0x3b   : > { %p3377_p11 = scmp.ne.s32.totalorder %s408_s22, %s3376_s30  ;;  %p3384_p0 = scmp.lt.s32.totalorder %s408_s22, %s408_s22 }
  0x3c   : > { %p3385_p2 = scmp.lt.s32.totalorder %s3376_s30, %s3376_s30 }
  0x3d   : > { %p3379_p12 = pnand %p3377_p11, %p3651_p7 }
  0x3e   : > { %3110 = dma.hbm_to_vmem [thread:$0]  (!%p3641_p6), %s4957_s5, 1024, %s3647_s20, [#allocation6], %s3526_s23, %s3526_s23, %s3527_s24  }
  0x3f   : > { %p3380_p13 = pneg %p3379_p12  ;;  %p3386_p5 = por %p3385_p2, %p3384_p0 }
  0x41   : > { %p3387_p8 = pnand %p3386_p5, %p3380_p13 }
  0x43   : > { %3390 = shalt.err (!%p3387_p8)
}
  0x44   : > { %s4958_s9 = sld [smem:[#allocation24_spill]]  ;;  %s3402_s19 = scalar_lea.vmem %s424_s3, 1024 }
  0x45   : > { %p3403_p9 = scmp.ne.s32.totalorder %s424_s3, %s3402_s19  ;;  %p3410_p12 = scmp.lt.s32.totalorder %s424_s3, %s424_s3 }
  0x46   : > { %p3411_p0 = scmp.lt.s32.totalorder %s3402_s19, %s3402_s19 }
  0x47   : > { %p3405_p10 = pnand %p3403_p9, %p3651_p7 }
  0x48   : > { %p3412_p13 = por %p3411_p0, %p3410_p12 }
  0x49   : > { %p3406_p11 = pneg %p3405_p10 }
  0x4a   : > { %3116 = dma.hbm_to_vmem [thread:$0]  (!%p3641_p6), %s4958_s9, 1024, %s408_s22, [#allocation9], %s3526_s23, %s3526_s23, %s3527_s24  }
  0x4b   : > { %p3413_p2 = pnand %p3412_p13, %p3406_p11 }
  0x4d   : > { %3416 = shalt.err (!%p3413_p2)
}
  0x4e   : > { %s4959_s11 = sld [smem:[#allocation25_spill]]  ;;  %s2631_s18 = sadd.s32 4294967294, %s3521_s28  }
  0x4f   : > { %s3717_s21 = sadd.s32 1, %s3521_s28   ;;  %s39_s22 = sadd.s32 1, %s3517_s27 }
  0x50   : > { %s36_s30 = ssub.s32 %s3521_s28, %s3717_s21  ;;  %p46_p7 = scmp.ne.s32.totalorder %s3517_s27, %s3513_s26 }
  0x51   : > { %p37_p5 = scmp.eq.s32.totalorder %s36_s30, 0  ;;  %p47_p8 = scmp.eq.s32.totalorder %s3521_s28, 0 }
  0x52   : > { %p52_p9 = scmp.ne.s32.totalorder %s3513_s26, %s3509_s25  ;;  %p328_p10 = scmp.eq.s32.totalorder %s3627_s14, 1 }
  0x53   : > { %s3729_s20 = scalar_select %p37_p5, %s3517_s27, %s39_s22  }
  0x54   : > { %3119 = dma.hbm_to_vmem [thread:$0]  (!%p3641_p6), %s4959_s11, 1024, %s424_s3, [#allocation12], %s3526_s23, %s3526_s23, %s3527_s24  }
  0x55   : > { %4960 = sst [smem:[#allocation20_spill]] %s3729_s20  ;;  %p48_p11 = por %p47_p8, %p46_p7 }
  0x56   : > { %p3733_p12 = por %p4941_p1, %p52_p9  ;;  %p3737_p6 = por %p328_p10, %p46_p7 }
  0x57   : > { %p334_p0 = scmp.eq.s32.totalorder %s2631_s18, 1  ;;  %p3133_p13 = scmp.lt.s32.totalorder %s3521_s28, 2 }
  0x58   : > { %s4961_s16 = scalar_select %p3733_p12, 1, 0 }
  0x59   : > { %s4962_s3 = scalar_select %p3737_p6, 1, 0 }
  0x5a   : > { %s440_s23 = sand.u32 1, %s3517_s27   ;;  %p3743_p2 = por %p334_p0, %p52_p9 }
  0x5b   : > { %s2639_s19 = sshll.u32 %s440_s23, 8  ;;  %s2702_s17 = sshll.u32 %s3521_s28, 12 }
  0x5c   : > { %s4963_s24 = scalar_select %p3743_p2, 1, 0 }
  0x5d   : > { %s3751_s30 = scalar_lea.hbm %s4927_s0, %s2702_s17  ;;  %s444_s5 = scalar_lea.vmem [#allocation2], %s2639_s19 }
  0x5e   : > { %s451_s7 = sshll.u32 %s444_s5, 4  ;;  %p3753_p7 = pnand %p3133_p13, %p48_p11  ;;  %s3757_s7 = int_to_ptr.vmem [resolvable:$true] %s451_s7 }
  0x5f   : > { %s3759_s9 = scalar_lea.sflag [#allocation3], %s440_s23  ;;  %s3417_s11 = scalar_lea.hbm %s3751_s30, 4096 }
  0x60   : > { %p3418_p5 = scmp.ne.s32.totalorder %s3751_s30, %s3417_s11  ;;  %p3419_p8 = pneg %p3753_p7 }
  0x61   : > { %s3422_s19 = scalar_lea.hbm %s4927_s0, 8192  ;;  %p3423_p11 = scmp.lt.s32.totalorder %s3751_s30, %s4927_s0 }
  0x62   : > { %p3420_p9 = pnand %p3419_p8, %p3418_p5  ;;  %p3424_p0 = scmp.lt.s32.totalorder %s3422_s19, %s3417_s11 }
  0x64   : > { %p3421_p10 = pneg %p3420_p9  ;;  %p3425_p13 = por %p3424_p0, %p3423_p11 }
  0x66   : > { %p3426_p4 = pnand %p3425_p13, %p3421_p10 }
  0x68   : > { %3429 = shalt.err (!%p3426_p4)
}
  0x69   : > { %s3430_s23 = scalar_lea.vmem %s3757_s7, 4096  ;;  %s3530_s20 = smov [#allocation2]  }
  0x6a   : > { %p3431_p1 = scmp.ne.s32.totalorder %s3757_s7, %s3430_s23  ;;  %s3435_s27 = sshll.u32 %s3530_s20, 4  ;;  %s3436_s27 = int_to_ptr.vmem [resolvable:$false] %s3435_s27 }
  0x6b   : > { %s3437_s17 = scalar_lea.vmem %s3436_s27, 8192  ;;  %p3438_p9 = scmp.lt.s32.totalorder %s3757_s7, %s3436_s27 }
  0x6c   : > { %p3433_p2 = pnand %p3431_p1, %p3419_p8  ;;  %p3439_p6 = scmp.lt.s32.totalorder %s3437_s17, %s3430_s23 }
  0x6e   : > { %p3434_p5 = pneg %p3433_p2  ;;  %p3440_p12 = por %p3439_p6, %p3438_p9 }
  0x70   : > { %p3441_p3 = pnand %p3440_p12, %p3434_p5 }
  0x72   : > { %3444 = shalt.err (!%p3441_p3)
}
  0x73   : > { %s3531_s11 = smov 128   ;;  %s3532_s29 = smov 8  }
  0x74   : > { %3123 = dma.hbm_to_vmem [thread:$0]  (!%p3753_p7), %s3751_s30, 4096, %s3757_s7, %s3759_s9, %s3531_s11, %s3531_s11, %s3532_s29  }
  0x75   : > { %p4965_p1 = scmp.ne.s32.totalorder %s4952_s15, 0 }
  0x76   : > { %s3783_s20 = sand.u32 (!%p4965_p1), 1, %s3513_s26   ;;  %p4966_p3 = scmp.ne.s32.totalorder (!%p4965_p1), %s4961_s16, 0 }
  0x77   : > { %463 = sbr.rel (%p4965_p1) target bundleno = 1553 (0x611), region = 72  ;;  %s2643_s27 = sshll.u32 (!%p4965_p1), %s3783_s20, 8 }
  0x78   : > { %s466_s19 = scalar_lea.sflag (!%p4965_p1), [#allocation3], %s3783_s20  ;;  %s3789_s5 = scalar_lea.vmem (!%p4965_p1), [#allocation2], %s2643_s27 }
  0x7c   : > { %3488 = dma.done.wait (%p4966_p3), %s466_s19, 4096  }
  0x7d   : > { %3490 = vsyncadd (%p4966_p3), %s466_s19, 4294963200  ;;  %p4967_p4 = scmp.eq.s32.totalorder %s3627_s14, 0 }
  0x7f   : > { %3492 = dma.done.wait (%p4967_p4), [#allocation6], 2048   ;;  %p4968_p12 = pmov %p4967_p4 }
  0x80   : > { %p4969_p6 = pmov %p4967_p4 }
  0x81   : > { %3494 = vsyncadd (%p4968_p12), [#allocation6], 4294965248 }
  0x82   : > { %3496 = dma.done.wait (%p4969_p6), [#allocation9], 2048   ;;  %p4970_p2 = pmov %p4967_p4 }
  0x84   : > { %3498 = vsyncadd (%p4970_p2), [#allocation9], 4294965248  ;;  %p4971_p7 = pmov %p4970_p2 }
  0x85   : > { %p4972_p8 = pmov %p4970_p2 }
  0x86   : > { %3500 = dma.done.wait (%p4971_p7), [#allocation12], 1024  }
  0x87   : > { %3502 = vsyncadd (%p4972_p8), [#allocation12], 4294966272  ;;  %v3808_v0 = vld [vmem:[%s3789_s5] sm:$0xff]  ;;  %v3811_v1 = vld [vmem:[%s3789_s5 + $0x10] sm:$0xff]  ;;  %v695_v32 = vlaneseq  ;;  %s4812_s9 = scalar_lea.vmem [#allocation13], %s2643_s27  ;;  %s2703_s27 = sshll.u32 %s3627_s14, 12 }
  0x88   : > { %567 = vadd.xlane.f32.xlu0 %v3808_v0  ;;  %571 = vadd.xlane.f32.xlu1 %v3811_v1  ;;  %v3816_v2 = vld [vmem:[%s3789_s5 + $0x8] sm:$0xff]  ;;  %v3819_v3 = vld [vmem:[%s3789_s5 + $0x18] sm:$0xff]  ;;  %v3824_v4 = vld [vmem:[%s3789_s5 + $0x20] sm:$0xff]  ;;  %s2510_s15 = sshll.u32 %s4812_s9, 4  ;;  %s4879_s18 = scalar_lea.hbm %s4940_s13, %s2703_s27  ;;  %s4881_s15 = int_to_ptr.vmem [resolvable:$true] %s2510_s15 }
  0x89   : > { %v3827_v5 = vld [vmem:[%s3789_s5 + $0x28] sm:$0xff]  ;;  %v3832_v6 = vld [vmem:[%s3789_s5 + $0x30] sm:$0xff]  ;;  %v3835_v7 = vld [vmem:[%s3789_s5 + $0x38] sm:$0xff]  ;;  %v3935_v33 = vand.u32 127, %v695_v32  ;;  %s2497_s14 = scalar_lea.sflag [#allocation4], %s3783_s20  ;;  %s3445_s22 = scalar_lea.vmem %s4881_s15, 4096 }
  0x8a   : > { %v3838_v8 = vld [vmem:[%s3789_s5 + $0x40] sm:$0xff]  ;;  %v3843_v9 = vld [vmem:[%s3789_s5 + $0x48] sm:$0xff]  ;;  %v3846_v10 = vld [vmem:[%s3789_s5 + $0x50] sm:$0xff]  ;;  %p3446_p10 = scmp.ne.s32.totalorder %s4881_s15, %s3445_s22  ;;  %p4973_p11 = scmp.ne.s32.totalorder %s4962_s3, 0 }
  0x8b   : > { %v3849_v11 = vld [vmem:[%s3789_s5 + $0x58] sm:$0xff]  ;;  %v3854_v12 = vld [vmem:[%s3789_s5 + $0x60] sm:$0xff]  ;;  %v3857_v13 = vld [vmem:[%s3789_s5 + $0x68] sm:$0xff]  ;;  %vm697_vm0 = vcmp.lt.s32.totalorder %v3935_v33, 16  ;;  %s3533_s23 = smov [#allocation13]  }
  0x8c   : > { %569 = vadd.xlane.f32.xlu0 %v3816_v2  ;;  %573 = vadd.xlane.f32.xlu1 %v3819_v3  ;;  %v3862_v14 = vld [vmem:[%s3789_s5 + $0x70] sm:$0xff]  ;;  %v3865_v15 = vld [vmem:[%s3789_s5 + $0x78] sm:$0xff]  ;;  %v3870_v16 = vld [vmem:[%s3789_s5 + $0x80] sm:$0xff]  ;;  %p3447_p0 = pnand %p3446_p10, %p4973_p11  ;;  %s3449_s17 = sshll.u32 %s3533_s23, 4  ;;  %s3450_s17 = int_to_ptr.vmem [resolvable:$false] %s3449_s17 }
  0x8d   : > { %v3873_v17 = vld [vmem:[%s3789_s5 + $0x88] sm:$0xff]  ;;  %v3878_v18 = vld [vmem:[%s3789_s5 + $0x90] sm:$0xff]  ;;  %v3881_v19 = vld [vmem:[%s3789_s5 + $0x98] sm:$0xff]  ;;  %s3451_s11 = scalar_lea.vmem %s3450_s17, 8192  ;;  %p3452_p5 = scmp.lt.s32.totalorder %s4881_s15, %s3450_s17 }
  0x8e   : > { %v3888_v20 = vld [vmem:[%s3789_s5 + $0xa0] sm:$0xff]  ;;  %v3891_v21 = vld [vmem:[%s3789_s5 + $0xa8] sm:$0xff]  ;;  %v3896_v22 = vld [vmem:[%s3789_s5 + $0xb0] sm:$0xff]  ;;  %p3448_p13 = pneg %p3447_p0  ;;  %p3453_p9 = scmp.lt.s32.totalorder %s3451_s11, %s3445_s22 }
  0x8f   : > { %v3899_v23 = vld [vmem:[%s3789_s5 + $0xb8] sm:$0xff]  ;;  %v3904_v24 = vld [vmem:[%s3789_s5 + $0xc0] sm:$0xff]  ;;  %v3907_v25 = vld [vmem:[%s3789_s5 + $0xc8] sm:$0xff] }
  0x90   : > { %575 = vadd.xlane.f32.xlu0 %v3824_v4  ;;  %577 = vadd.xlane.f32.xlu1 %v3827_v5  ;;  %v3912_v26 = vld [vmem:[%s3789_s5 + $0xd0] sm:$0xff]  ;;  %v3915_v27 = vld [vmem:[%s3789_s5 + $0xd8] sm:$0xff]  ;;  %v3920_v28 = vld [vmem:[%s3789_s5 + $0xe0] sm:$0xff]  ;;  %p3454_p1 = por %p3453_p9, %p3452_p5 }
  0x91   : > { %v3923_v29 = vld [vmem:[%s3789_s5 + $0xe8] sm:$0xff]  ;;  %v3928_v30 = vld [vmem:[%s3789_s5 + $0xf0] sm:$0xff]  ;;  %v3931_v31 = vld [vmem:[%s3789_s5 + $0xf8] sm:$0xff] }
  0x92   : > { %p3455_p3 = pnand %p3454_p1, %p3448_p13 }
  0x94   : > { %579 = vadd.xlane.f32.xlu0 %v3832_v6  ;;  %581 = vadd.xlane.f32.xlu1 %v3835_v7 }
  0x98   : > { %583 = vadd.xlane.f32.xlu0 %v3838_v8  ;;  %585 = vadd.xlane.f32.xlu1 %v3843_v9 }
  0x9c   : > { %587 = vadd.xlane.f32.xlu0 %v3846_v10  ;;  %589 = vadd.xlane.f32.xlu1 %v3849_v11 }
  0xa0   : > { %591 = vadd.xlane.f32.xlu0 %v3854_v12  ;;  %593 = vadd.xlane.f32.xlu1 %v3857_v13 }
  0xa4   : > { %595 = vadd.xlane.f32.xlu0 %v3862_v14  ;;  %597 = vadd.xlane.f32.xlu1 %v3865_v15 }
  0xa8   : > { %599 = vadd.xlane.f32.xlu0 %v3870_v16  ;;  %601 = vadd.xlane.f32.xlu1 %v3873_v17 }
  0xac   : > { %603 = vadd.xlane.f32.xlu0 %v3878_v18  ;;  %605 = vadd.xlane.f32.xlu1 %v3881_v19 }
  0xb0   : > { %607 = vadd.xlane.f32.xlu0 %v3888_v20  ;;  %609 = vadd.xlane.f32.xlu1 %v3891_v21 }
  0xb4   : > { %611 = vadd.xlane.f32.xlu0 %v3896_v22  ;;  %613 = vadd.xlane.f32.xlu1 %v3899_v23 }
  0xb8   : > { %615 = vadd.xlane.f32.xlu0 %v3904_v24  ;;  %617 = vadd.xlane.f32.xlu1 %v3907_v25 }
  0xbc   : > { %619 = vadd.xlane.f32.xlu0 %v3912_v26  ;;  %621 = vadd.xlane.f32.xlu1 %v3915_v27 }
  0xc0   : > { %623 = vadd.xlane.f32.xlu0 %v3920_v28  ;;  %625 = vadd.xlane.f32.xlu1 %v3923_v29 }
  0xc4   : > { %627 = vadd.xlane.f32.xlu0 %v3928_v30  ;;  %629 = vadd.xlane.f32.xlu1 %v3931_v31 }
 0x111   : > { %v568_v34 = vpop.xlane.xlu0 %567  ;;  %v572_v35 = vpop.xlane.xlu1 %571 }
 0x112   : > { %v631_v36 = vmul.f32 0.0625, %v568_v34  ;;  %v633_v37 = vmul.f32 0.0625, %v572_v35 }
 0x114   : > { %v663_v38 = vsub.f32 %v3808_v0, %v631_v36  ;;  %v665_v39 = vsub.f32 %v3811_v1, %v633_v37 }
 0x115   : > { %v570_v40 = vpop.xlane.xlu0 %569  ;;  %v574_v41 = vpop.xlane.xlu1 %573 }
 0x116   : > { %v632_v42 = vmul.f32 0.0625, %v570_v40  ;;  %v634_v43 = vmul.f32 0.0625, %v574_v41  ;;  %v3942_v44 = vsel %vm697_vm0, %v663_v38, 0.0  ;;  %v3946_v45 = vsel %vm697_vm0, %v665_v39, 0.0 }
 0x117   : > { %v730_v46 = vmul.f32 %v3942_v44, %v3942_v44  ;;  %v732_v51 = vmul.f32 %v3946_v45, %v3946_v45 }
 0x118   : > { %v664_v47 = vsub.f32 %v3816_v2, %v632_v42  ;;  %v666_v48 = vsub.f32 %v3819_v3, %v634_v43 }
 0x119   : > { %762 = vadd.xlane.f32.xlu0 %v730_v46  ;;  %v576_v49 = vpop.xlane.xlu0 %575  ;;  %v578_v50 = vpop.xlane.xlu1 %577 }
 0x11a   : > { %v635_v52 = vmul.f32 0.0625, %v576_v49  ;;  %v636_v53 = vmul.f32 0.0625, %v578_v50  ;;  %v3956_v54 = vsel %vm697_vm0, %v664_v47, 0.0  ;;  %v3960_v55 = vsel %vm697_vm0, %v666_v48, 0.0 }
 0x11b   : > { %v731_v56 = vmul.f32 %v3956_v54, %v3956_v54  ;;  %v733_v61 = vmul.f32 %v3960_v55, %v3960_v55 }
 0x11c   : > { %v667_v57 = vsub.f32 %v3824_v4, %v635_v52  ;;  %v668_v58 = vsub.f32 %v3827_v5, %v636_v53 }
 0x11d   : > { %766 = vadd.xlane.f32.xlu0 %v732_v51  ;;  %764 = vadd.xlane.f32.xlu1 %v731_v56  ;;  %v580_v59 = vpop.xlane.xlu0 %579  ;;  %v582_v60 = vpop.xlane.xlu1 %581  ;;  %v3184_v51 = vld [vmem:[#allocation5 + $0x30] sm:$0xff]  }
 0x11e   : > { %v637_v62 = vmul.f32 0.0625, %v580_v59  ;;  %v638_v63 = vmul.f32 0.0625, %v582_v60  ;;  %v3970_v0 = vsel %vm697_vm0, %v667_v57, 0.0  ;;  %v3974_v1 = vsel %vm697_vm0, %v668_v58, 0.0 }
 0x11f   : > { %v734_v2 = vmul.f32 %v3970_v0, %v3970_v0  ;;  %v735_v34 = vmul.f32 %v3974_v1, %v3974_v1 }
 0x120   : > { %v669_v3 = vsub.f32 %v3832_v6, %v637_v62  ;;  %v670_v4 = vsub.f32 %v3835_v7, %v638_v63  ;;  %v3183_v7 = vld [vmem:[#allocation5 + $0x38] sm:$0xff]   ;;  %v3185_v62 = vld [vmem:[#allocation5 + $0x28] sm:$0xff]  }
 0x121   : > { %768 = vadd.xlane.f32.xlu1 %v733_v61  ;;  %770 = vadd.xlane.f32.xlu0 %v734_v2  ;;  %v584_v5 = vpop.xlane.xlu0 %583  ;;  %v586_v32 = vpop.xlane.xlu1 %585 }
 0x122   : > { %v639_v35 = vmul.f32 0.0625, %v584_v5  ;;  %v640_v36 = vmul.f32 0.0625, %v586_v32  ;;  %v3984_v37 = vsel %vm697_vm0, %v669_v3, 0.0  ;;  %v3988_v38 = vsel %vm697_vm0, %v670_v4, 0.0  ;;  %2824 = vmatprep.subr.bf16.mxu0 %v3183_v7  ;;  %3064 = vmatprep.subr.bf16.mxu1 %v3183_v7 }
 0x123   : > { %v736_v6 = vmul.f32 %v3984_v37, %v3984_v37  ;;  %v737_v43 = vmul.f32 %v3988_v38, %v3988_v38  ;;  %2825 = vmatpush3.bf16.msra.mxu0 %v3183_v7  ;;  %3072 = vmatpush3.bf16.msra.mxu1 %v3183_v7 }
 0x124   : > { %v671_v39 = vsub.f32 %v3838_v8, %v639_v35  ;;  %v672_v40 = vsub.f32 %v3843_v9, %v640_v36  ;;  %2826 = vmatprep.subr.bf16.mxu0 %v3184_v51  ;;  %3065 = vmatprep.subr.bf16.mxu1 %v3184_v51  ;;  %v3186_v36 = vld [vmem:[#allocation5 + $0x20] sm:$0xff]  }
 0x125   : > { %772 = vadd.xlane.f32.xlu1 %v735_v34  ;;  %774 = vadd.xlane.f32.xlu0 %v736_v6  ;;  %v588_v41 = vpop.xlane.xlu0 %587  ;;  %v590_v42 = vpop.xlane.xlu1 %589 }
 0x126   : > { %v641_v46 = vmul.f32 0.0625, %v588_v41  ;;  %v642_v47 = vmul.f32 0.0625, %v590_v42  ;;  %v3998_v48 = vsel %vm697_vm0, %v671_v39, 0.0  ;;  %v4002_v49 = vsel %vm697_vm0, %v672_v40, 0.0 }
 0x127   : > { %v738_v8 = vmul.f32 %v3998_v48, %v3998_v48  ;;  %v739_v56 = vmul.f32 %v4002_v49, %v4002_v49  ;;  %2827 = vmatpush3.bf16.msra.mxu0 %v3184_v51  ;;  %3073 = vmatpush3.bf16.msra.mxu1 %v3184_v51 }
 0x128   : > { %v673_v9 = vsub.f32 %v3846_v10, %v641_v46  ;;  %v674_v50 = vsub.f32 %v3849_v11, %v642_v47  ;;  %2828 = vmatprep.subr.bf16.mxu0 %v3185_v62  ;;  %3066 = vmatprep.subr.bf16.mxu1 %v3185_v62  ;;  %v3187_v47 = vld [vmem:[#allocation5 + $0x18] sm:$0xff]  }
 0x129   : > { %776 = vadd.xlane.f32.xlu1 %v737_v43  ;;  %778 = vadd.xlane.f32.xlu0 %v738_v8  ;;  %v592_v52 = vpop.xlane.xlu0 %591  ;;  %v594_v53 = vpop.xlane.xlu1 %593 }
 0x12a   : > { %v643_v57 = vmul.f32 0.0625, %v592_v52  ;;  %v644_v58 = vmul.f32 0.0625, %v594_v53  ;;  %v4012_v59 = vsel %vm697_vm0, %v673_v9, 0.0  ;;  %v4016_v60 = vsel %vm697_vm0, %v674_v50, 0.0 }
 0x12b   : > { %v740_v10 = vmul.f32 %v4012_v59, %v4012_v59  ;;  %v741_v3 = vmul.f32 %v4016_v60, %v4016_v60  ;;  %2829 = vmatpush3.bf16.msra.mxu0 %v3185_v62  ;;  %3074 = vmatpush3.bf16.msra.mxu1 %v3185_v62 }
 0x12c   : > { %v675_v11 = vsub.f32 %v3854_v12, %v643_v57  ;;  %v676_v61 = vsub.f32 %v3857_v13, %v644_v58  ;;  %2830 = vmatprep.subr.bf16.mxu0 %v3186_v36  ;;  %3067 = vmatprep.subr.bf16.mxu1 %v3186_v36  ;;  %v3188_v58 = vld [vmem:[#allocation5 + $0x10] sm:$0xff]  }
 0x12d   : > { %780 = vadd.xlane.f32.xlu1 %v739_v56  ;;  %782 = vadd.xlane.f32.xlu0 %v740_v10  ;;  %v596_v63 = vpop.xlane.xlu0 %595  ;;  %v598_v2 = vpop.xlane.xlu1 %597 }
 0x12e   : > { %v645_v4 = vmul.f32 0.0625, %v596_v63  ;;  %v646_v5 = vmul.f32 0.0625, %v598_v2  ;;  %v4026_v32 = vsel %vm697_vm0, %v675_v11, 0.0  ;;  %v4030_v34 = vsel %vm697_vm0, %v676_v61, 0.0 }
 0x12f   : > { %v742_v12 = vmul.f32 %v4026_v32, %v4026_v32  ;;  %v743_v39 = vmul.f32 %v4030_v34, %v4030_v34  ;;  %2831 = vmatpush3.bf16.msra.mxu0 %v3186_v36  ;;  %3075 = vmatpush3.bf16.msra.mxu1 %v3186_v36 }
 0x130   : > { %v677_v13 = vsub.f32 %v3862_v14, %v645_v4  ;;  %v678_v35 = vsub.f32 %v3865_v15, %v646_v5  ;;  %2832 = vmatprep.subr.bf16.mxu0 %v3187_v47  ;;  %3068 = vmatprep.subr.bf16.mxu1 %v3187_v47  ;;  %v3189_v5 = vld [vmem:[#allocation5 + $0x8] sm:$0xff]  }
 0x131   : > { %784 = vadd.xlane.f32.xlu1 %v741_v3  ;;  %786 = vadd.xlane.f32.xlu0 %v742_v12  ;;  %v600_v6 = vpop.xlane.xlu0 %599  ;;  %v602_v7 = vpop.xlane.xlu1 %601 }
 0x132   : > { %v647_v40 = vmul.f32 0.0625, %v600_v6  ;;  %v648_v41 = vmul.f32 0.0625, %v602_v7  ;;  %v4040_v42 = vsel %vm697_vm0, %v677_v13, 0.0  ;;  %v4044_v43 = vsel %vm697_vm0, %v678_v35, 0.0 }
 0x133   : > { %v744_v14 = vmul.f32 %v4040_v42, %v4040_v42  ;;  %v745_v50 = vmul.f32 %v4044_v43, %v4044_v43  ;;  %2833 = vmatpush3.bf16.msra.mxu0 %v3187_v47  ;;  %3076 = vmatpush3.bf16.msra.mxu1 %v3187_v47 }
 0x134   : > { %v679_v15 = vsub.f32 %v3870_v16, %v647_v40  ;;  %v680_v46 = vsub.f32 %v3873_v17, %v648_v41  ;;  %2834 = vmatprep.subr.bf16.mxu0 %v3188_v58  ;;  %3069 = vmatprep.subr.bf16.mxu1 %v3188_v58  ;;  %v3190_v41 = vld [vmem:[#allocation5] sm:$0xff]  }
 0x135   : > { %788 = vadd.xlane.f32.xlu1 %v743_v39  ;;  %790 = vadd.xlane.f32.xlu0 %v744_v14  ;;  %v604_v8 = vpop.xlane.xlu0 %603  ;;  %v606_v9 = vpop.xlane.xlu1 %605 }
 0x136   : > { %v649_v51 = vmul.f32 0.0625, %v604_v8  ;;  %v650_v52 = vmul.f32 0.0625, %v606_v9  ;;  %v4054_v53 = vsel %vm697_vm0, %v679_v15, 0.0  ;;  %v4058_v56 = vsel %vm697_vm0, %v680_v46, 0.0 }
 0x137   : > { %v746_v16 = vmul.f32 %v4054_v53, %v4054_v53  ;;  %v747_v61 = vmul.f32 %v4058_v56, %v4058_v56  ;;  %2835 = vmatpush3.bf16.msra.mxu0 %v3188_v58  ;;  %3077 = vmatpush3.bf16.msra.mxu1 %v3188_v58 }
 0x138   : > { %v681_v17 = vsub.f32 %v3878_v18, %v649_v51  ;;  %v682_v57 = vsub.f32 %v3881_v19, %v650_v52  ;;  %2836 = vmatprep.subr.bf16.mxu0 %v3189_v5  ;;  %3070 = vmatprep.subr.bf16.mxu1 %v3189_v5 }
 0x139   : > { %792 = vadd.xlane.f32.xlu1 %v745_v50  ;;  %794 = vadd.xlane.f32.xlu0 %v746_v16  ;;  %v608_v10 = vpop.xlane.xlu0 %607  ;;  %v610_v11 = vpop.xlane.xlu1 %609 }
 0x13a   : > { %v651_v62 = vmul.f32 0.0625, %v608_v10  ;;  %v652_v63 = vmul.f32 0.0625, %v610_v11  ;;  %v4068_v2 = vsel %vm697_vm0, %v681_v17, 0.0  ;;  %v4072_v3 = vsel %vm697_vm0, %v682_v57, 0.0 }
 0x13b   : > { %v748_v18 = vmul.f32 %v4068_v2, %v4068_v2  ;;  %v749_v35 = vmul.f32 %v4072_v3, %v4072_v3  ;;  %2837 = vmatpush3.bf16.msra.mxu0 %v3189_v5  ;;  %3078 = vmatpush3.bf16.msra.mxu1 %v3189_v5 }
 0x13c   : > { %v683_v19 = vsub.f32 %v3888_v20, %v651_v62  ;;  %v684_v4 = vsub.f32 %v3891_v21, %v652_v63  ;;  %2838 = vmatprep.subr.bf16.mxu0 %v3190_v41  ;;  %3071 = vmatprep.subr.bf16.mxu1 %v3190_v41 }
 0x13d   : > { %796 = vadd.xlane.f32.xlu1 %v747_v61  ;;  %798 = vadd.xlane.f32.xlu0 %v748_v18  ;;  %v612_v12 = vpop.xlane.xlu0 %611  ;;  %v614_v13 = vpop.xlane.xlu1 %613 }
 0x13e   : > { %v653_v36 = vmul.f32 0.0625, %v612_v12  ;;  %v654_v6 = vmul.f32 0.0625, %v614_v13  ;;  %v4082_v7 = vsel %vm697_vm0, %v683_v19, 0.0  ;;  %v4086_v39 = vsel %vm697_vm0, %v684_v4, 0.0 }
 0x13f   : > { %v750_v20 = vmul.f32 %v4082_v7, %v4082_v7  ;;  %v751_v46 = vmul.f32 %v4086_v39, %v4086_v39  ;;  %2839 = vmatpush3.bf16.msra.mxu0 %v3190_v41  ;;  %3079 = vmatpush3.bf16.msra.mxu1 %v3190_v41 }
 0x140   : > { %v685_v21 = vsub.f32 %v3896_v22, %v653_v36  ;;  %v686_v40 = vsub.f32 %v3899_v23, %v654_v6 }
 0x141   : > { %800 = vadd.xlane.f32.xlu1 %v749_v35  ;;  %802 = vadd.xlane.f32.xlu0 %v750_v20  ;;  %v616_v14 = vpop.xlane.xlu0 %615  ;;  %v618_v15 = vpop.xlane.xlu1 %617 }
 0x142   : > { %v655_v47 = vmul.f32 0.0625, %v616_v14  ;;  %v656_v8 = vmul.f32 0.0625, %v618_v15  ;;  %v4096_v9 = vsel %vm697_vm0, %v685_v21, 0.0  ;;  %v4100_v50 = vsel %vm697_vm0, %v686_v40, 0.0 }
 0x143   : > { %v752_v22 = vmul.f32 %v4096_v9, %v4096_v9  ;;  %v753_v17 = vmul.f32 %v4100_v50, %v4100_v50 }
 0x144   : > { %v687_v23 = vsub.f32 %v3904_v24, %v655_v47  ;;  %v688_v51 = vsub.f32 %v3907_v25, %v656_v8 }
 0x145   : > { %804 = vadd.xlane.f32.xlu1 %v751_v46  ;;  %806 = vadd.xlane.f32.xlu0 %v752_v22  ;;  %v620_v52 = vpop.xlane.xlu0 %619  ;;  %v622_v16 = vpop.xlane.xlu1 %621 }
 0x146   : > { %v657_v57 = vmul.f32 0.0625, %v620_v52  ;;  %v658_v58 = vmul.f32 0.0625, %v622_v16  ;;  %v4110_v10 = vsel %vm697_vm0, %v687_v23, 0.0  ;;  %v4114_v11 = vsel %vm697_vm0, %v688_v51, 0.0 }
 0x147   : > { %v754_v24 = vmul.f32 %v4110_v10, %v4110_v10  ;;  %v755_v18 = vmul.f32 %v4114_v11, %v4114_v11 }
 0x148   : > { %v689_v25 = vsub.f32 %v3912_v26, %v657_v57  ;;  %v690_v61 = vsub.f32 %v3915_v27, %v658_v58 }
 0x149   : > { %808 = vadd.xlane.f32.xlu1 %v753_v17  ;;  %810 = vadd.xlane.f32.xlu0 %v754_v24  ;;  %v624_v62 = vpop.xlane.xlu0 %623  ;;  %v626_v63 = vpop.xlane.xlu1 %625 }
 0x14a   : > { %v659_v19 = vmul.f32 0.0625, %v624_v62  ;;  %v660_v4 = vmul.f32 0.0625, %v626_v63  ;;  %v4124_v5 = vsel %vm697_vm0, %v689_v25, 0.0  ;;  %v4128_v12 = vsel %vm697_vm0, %v690_v61, 0.0 }
 0x14b   : > { %v756_v26 = vmul.f32 %v4124_v5, %v4124_v5  ;;  %v757_v6 = vmul.f32 %v4128_v12, %v4128_v12 }
 0x14c   : > { %v691_v27 = vsub.f32 %v3920_v28, %v659_v19  ;;  %v692_v13 = vsub.f32 %v3923_v29, %v660_v4 }
 0x14d   : > { %812 = vadd.xlane.f32.xlu1 %v755_v18  ;;  %814 = vadd.xlane.f32.xlu0 %v756_v26  ;;  %v628_v35 = vpop.xlane.xlu0 %627  ;;  %v630_v36 = vpop.xlane.xlu1 %629 }
 0x14e   : > { %v661_v20 = vmul.f32 0.0625, %v628_v35  ;;  %v662_v21 = vmul.f32 0.0625, %v630_v36  ;;  %v4138_v40 = vsel %vm697_vm0, %v691_v27, 0.0  ;;  %v4142_v41 = vsel %vm697_vm0, %v692_v13, 0.0 }
 0x14f   : > { %v758_v28 = vmul.f32 %v4138_v40, %v4138_v40  ;;  %v759_v15 = vmul.f32 %v4142_v41, %v4142_v41 }
 0x150   : > { %v693_v29 = vsub.f32 %v3928_v30, %v661_v20  ;;  %v694_v14 = vsub.f32 %v3931_v31, %v662_v21  ;;  %v4162_v31 = vld [vmem:[#allocation7 + $0x38] sm:$0xff]  }
 0x151   : > { %816 = vadd.xlane.f32.xlu1 %v757_v6  ;;  %818 = vadd.xlane.f32.xlu0 %v758_v28 }
 0x152   : > { %v4152_v46 = vsel %vm697_vm0, %v693_v29, 0.0  ;;  %v4156_v47 = vsel %vm697_vm0, %v694_v14, 0.0  ;;  %2872 = vmatprep.subr.bf16.mxu1 %v4162_v31 }
 0x153   : > { %v760_v8 = vmul.f32 %v4152_v46, %v4152_v46  ;;  %v761_v30 = vmul.f32 %v4156_v47, %v4156_v47 }
 0x155   : > { %820 = vadd.xlane.f32.xlu1 %v759_v15  ;;  %822 = vadd.xlane.f32.xlu0 %v760_v8  ;;  %v4169_v8 = vld [vmem:[%s4928_s1] ss:$0 sm:$0xff] }
 0x159   : > { %824 = vadd.xlane.f32.xlu1 %v761_v30 }
 0x1a2   : > { %v763_v22 = vpop.xlane.xlu0 %762 }
 0x1a3   : > { %v826_v23 = vmul.f32 0.0625, %v763_v22 }
 0x1a5   : > { %v858_v51 = vadd.f32 1e-05, %v826_v23 }
 0x1a6   : > { %v765_v52 = vpop.xlane.xlu1 %764  ;;  %v767_v33 = vpop.xlane.xlu0 %766 }
 0x1a7   : > { %3223 = vrsqrt.f32 %v858_v51  ;;  %v827_v16 = vmul.f32 0.0625, %v765_v52  ;;  %v828_v17 = vmul.f32 0.0625, %v767_v33 }
 0x1a9   : > { %v859_v57 = vadd.f32 1e-05, %v827_v16  ;;  %v860_v58 = vadd.f32 1e-05, %v828_v17 }
 0x1aa   : > { %v769_v24 = vpop.xlane.xlu1 %768  ;;  %v771_v25 = vpop.xlane.xlu0 %770 }
 0x1ab   : > { %3225 = vrsqrt.f32 %v859_v57  ;;  %v829_v61 = vmul.f32 0.0625, %v769_v24  ;;  %v830_v62 = vmul.f32 0.0625, %v771_v25 }
 0x1ac   : > { %3227 = vrsqrt.f32 %v860_v58 }
 0x1ad   : > { %v861_v63 = vadd.f32 1e-05, %v829_v61  ;;  %v862_v18 = vadd.f32 1e-05, %v830_v62 }
 0x1ae   : > { %v773_v19 = vpop.xlane.xlu1 %772  ;;  %v775_v4 = vpop.xlane.xlu0 %774 }
 0x1af   : > { %3229 = vrsqrt.f32 %v861_v63  ;;  %v831_v26 = vmul.f32 0.0625, %v773_v19  ;;  %v832_v27 = vmul.f32 0.0625, %v775_v4 }
 0x1b0   : > { %3231 = vrsqrt.f32 %v862_v18 }
 0x1b1   : > { %v863_v13 = vadd.f32 1e-05, %v831_v26  ;;  %v864_v35 = vadd.f32 1e-05, %v832_v27 }
 0x1b2   : > { %v777_v36 = vpop.xlane.xlu1 %776  ;;  %v779_v6 = vpop.xlane.xlu0 %778 }
 0x1b3   : > { %3233 = vrsqrt.f32 %v863_v13  ;;  %v833_v20 = vmul.f32 0.0625, %v777_v36  ;;  %v834_v21 = vmul.f32 0.0625, %v779_v6 }
 0x1b4   : > { %v3224_v28 = vpop.eup %3223  ;;  %3235 = vrsqrt.f32 %v864_v35 }
 0x1b5   : > { %v865_v29 = vadd.f32 1e-05, %v833_v20  ;;  %v866_v14 = vadd.f32 1e-05, %v834_v21  ;;  %v922_v15 = vmul.f32 %v3224_v28, %v3942_v44  ;;  %v4176_v44 = vld [vmem:[%s4929_s2] ss:$0 sm:$0xff] }
 0x1b6   : > { %v781_v30 = vpop.xlane.xlu1 %780  ;;  %v783_v22 = vpop.xlane.xlu0 %782 }
 0x1b7   : > { %3237 = vrsqrt.f32 %v865_v29  ;;  %v835_v23 = vmul.f32 0.0625, %v781_v30  ;;  %v836_v51 = vmul.f32 0.0625, %v783_v22  ;;  %v961_v33 = vmul.f32 %v4169_v8, %v922_v15 }
 0x1b8   : > { %v3226_v52 = vpop.eup %3225  ;;  %3239 = vrsqrt.f32 %v866_v14 }
 0x1b9   : > { %v3228_v16 = vpop.eup %3227  ;;  %v867_v17 = vadd.f32 1e-05, %v835_v23  ;;  %v868_v57 = vadd.f32 1e-05, %v836_v51  ;;  %v923_v58 = vmul.f32 %v3226_v52, %v3956_v54  ;;  %v1000_v4 = vadd.f32 %v4176_v44, %v961_v33 }
 0x1ba   : > { %v785_v24 = vpop.xlane.xlu1 %784  ;;  %v787_v25 = vpop.xlane.xlu0 %786  ;;  %v924_v61 = vmul.f32 %v3228_v16, %v3946_v45 }
 0x1bb   : > { %3241 = vrsqrt.f32 %v867_v17  ;;  %v837_v62 = vmul.f32 0.0625, %v785_v24  ;;  %v838_v63 = vmul.f32 0.0625, %v787_v25  ;;  %v962_v18 = vmul.f32 %v4169_v8, %v923_v58 }
 0x1bc   : > { %v3230_v19 = vpop.eup %3229  ;;  %3243 = vrsqrt.f32 %v868_v57  ;;  %v963_v45 = vmul.f32 %v4169_v8, %v924_v61 }
 0x1bd   : > { %v3232_v26 = vpop.eup %3231  ;;  %v869_v54 = vadd.f32 1e-05, %v837_v62  ;;  %v870_v27 = vadd.f32 1e-05, %v838_v63  ;;  %v1001_v13 = vadd.f32 %v4176_v44, %v962_v18  ;;  %v925_v35 = vmul.f32 %v3230_v19, %v3960_v55 }
 0x1be   : > { %v789_v36 = vpop.xlane.xlu1 %788  ;;  %v791_v6 = vpop.xlane.xlu0 %790  ;;  %v926_v20 = vmul.f32 %v3232_v26, %v3970_v0  ;;  %v1002_v0 = vadd.f32 %v4176_v44, %v963_v45 }
 0x1bf   : > { %3245 = vrsqrt.f32 %v869_v54  ;;  %v839_v21 = vmul.f32 0.0625, %v789_v36  ;;  %v840_v28 = vmul.f32 0.0625, %v791_v6  ;;  %v1032_v29 = vpack.c.bf16 %v1001_v13, %v1000_v4 }
 0x1c0   : > { %v3234_v14 = vpop.eup %3233  ;;  %3247 = vrsqrt.f32 %v870_v27  ;;  %v964_v15 = vmul.f32 %v4169_v8, %v925_v35  ;;  %v965_v30 = vmul.f32 %v4169_v8, %v926_v20 }
 0x1c1   : > { %v3236_v22 = vpop.eup %3235  ;;  %v871_v23 = vadd.f32 1e-05, %v839_v21  ;;  %v872_v51 = vadd.f32 1e-05, %v840_v28  ;;  %2840 = vmatprep.mubr.bf16.mxu0 %v1032_v29  ;;  %v927_v55 = vmul.f32 %v3234_v14, %v3974_v1 }
 0x1c2   : > { %v793_v52 = vpop.xlane.xlu1 %792  ;;  %v795_v33 = vpop.xlane.xlu0 %794  ;;  %v1003_v16 = vadd.f32 %v4176_v44, %v964_v15  ;;  %v928_v17 = vmul.f32 %v3236_v22, %v3984_v37  ;;  %v1004_v62 = vadd.f32 %v4176_v44, %v965_v30 }
 0x1c3   : > { %3249 = vrsqrt.f32 %v871_v23  ;;  %v841_v57 = vmul.f32 0.0625, %v793_v52  ;;  %v842_v58 = vmul.f32 0.0625, %v795_v33  ;;  %v966_v24 = vmul.f32 %v4169_v8, %v927_v55 }
 0x1c4   : > { %v3238_v25 = vpop.eup %3237  ;;  %3251 = vrsqrt.f32 %v872_v51  ;;  %v1033_v61 = vpack.c.bf16 %v1003_v16, %v1002_v0  ;;  %v967_v54 = vmul.f32 %v4169_v8, %v928_v17 }
 0x1c5   : > { %v3240_v63 = vpop.eup %3239  ;;  %v873_v1 = vadd.f32 1e-05, %v841_v57  ;;  %v874_v18 = vadd.f32 1e-05, %v842_v58  ;;  %v1005_v19 = vadd.f32 %v4176_v44, %v966_v24  ;;  %v929_v4 = vmul.f32 %v3238_v25, %v3988_v38 }
 0x1c6   : > { %2841 = vmatmul.mubr.bf16.vlgmr.msra.gmra.mxu0 %v1033_v61  ;;  %v797_v26 = vpop.xlane.xlu1 %796  ;;  %v799_v37 = vpop.xlane.xlu0 %798  ;;  %v930_v27 = vmul.f32 %v3240_v63, %v3998_v48  ;;  %v1006_v48 = vadd.f32 %v4176_v44, %v967_v54 }
 0x1c7   : > { %3253 = vrsqrt.f32 %v873_v1  ;;  %v843_v13 = vmul.f32 0.0625, %v797_v26  ;;  %v844_v35 = vmul.f32 0.0625, %v799_v37  ;;  %v1034_v36 = vpack.c.bf16 %v1005_v19, %v1004_v62 }
 0x1c8   : > { %v3242_v6 = vpop.eup %3241  ;;  %3255 = vrsqrt.f32 %v874_v18  ;;  %v968_v45 = vmul.f32 %v4169_v8, %v929_v4  ;;  %v969_v20 = vmul.f32 %v4169_v8, %v930_v27 }
 0x1c9   : > { %v3244_v21 = vpop.eup %3243  ;;  %v875_v28 = vadd.f32 1e-05, %v843_v13  ;;  %v876_v38 = vadd.f32 1e-05, %v844_v35  ;;  %2844 = vmatprep.mubr.bf16.mxu0 %v1034_v36  ;;  %v931_v29 = vmul.f32 %v3242_v6, %v4002_v49 }
 0x1ca   : > { %v801_v14 = vpop.xlane.xlu1 %800  ;;  %v803_v15 = vpop.xlane.xlu0 %802  ;;  %v1007_v30 = vadd.f32 %v4176_v44, %v968_v45  ;;  %v932_v22 = vmul.f32 %v3244_v21, %v4012_v59  ;;  %v1008_v0 = vadd.f32 %v4176_v44, %v969_v20 }
 0x1cb   : > { %3257 = vrsqrt.f32 %v875_v28  ;;  %v845_v23 = vmul.f32 0.0625, %v801_v14  ;;  %v846_v51 = vmul.f32 0.0625, %v803_v15  ;;  %v970_v55 = vmul.f32 %v4169_v8, %v931_v29 }
 0x1cc   : > { %v3246_v52 = vpop.eup %3245  ;;  %3259 = vrsqrt.f32 %v876_v38  ;;  %v1035_v33 = vpack.c.bf16 %v1007_v30, %v1006_v48  ;;  %v971_v25 = vmul.f32 %v4169_v8, %v932_v22 }
 0x1cd   : > { %v3248_v16 = vpop.eup %3247  ;;  %v877_v49 = vadd.f32 1e-05, %v845_v23  ;;  %v878_v17 = vadd.f32 1e-05, %v846_v51  ;;  %v1009_v57 = vadd.f32 %v4176_v44, %v970_v55  ;;  %v933_v58 = vmul.f32 %v3246_v52, %v4016_v60 }
 0x1ce   : > { %2845 = vmatmul.mubr.bf16.gmra.mxu0 %v1035_v33  ;;  %v805_v24 = vpop.xlane.xlu1 %804  ;;  %v807_v59 = vpop.xlane.xlu0 %806  ;;  %v934_v61 = vmul.f32 %v3248_v16, %v4026_v32  ;;  %v1010_v32 = vadd.f32 %v4176_v44, %v971_v25 }
 0x1cf   : > { %3261 = vrsqrt.f32 %v877_v49  ;;  %v847_v62 = vmul.f32 0.0625, %v805_v24  ;;  %v848_v63 = vmul.f32 0.0625, %v807_v59  ;;  %v1036_v1 = vpack.c.bf16 %v1009_v57, %v1008_v0 }
 0x1d0   : > { %v3250_v18 = vpop.eup %3249  ;;  %3263 = vrsqrt.f32 %v878_v17  ;;  %v972_v19 = vmul.f32 %v4169_v8, %v933_v58  ;;  %v973_v4 = vmul.f32 %v4169_v8, %v934_v61 }
 0x1d1   : > { %v3252_v26 = vpop.eup %3251  ;;  %v879_v37 = vadd.f32 1e-05, %v847_v62  ;;  %v880_v60 = vadd.f32 1e-05, %v848_v63  ;;  %2848 = vmatprep.mubr.bf16.mxu0 %v1036_v1  ;;  %v935_v54 = vmul.f32 %v3250_v18, %v4030_v34 }
 0x1d2   : > { %v809_v27 = vpop.xlane.xlu1 %808  ;;  %v811_v13 = vpop.xlane.xlu0 %810  ;;  %v1011_v35 = vadd.f32 %v4176_v44, %v972_v19  ;;  %v936_v36 = vmul.f32 %v3252_v26, %v4040_v42  ;;  %v1012_v38 = vadd.f32 %v4176_v44, %v973_v4 }
 0x1d3   : > { %3265 = vrsqrt.f32 %v879_v37  ;;  %v849_v6 = vmul.f32 0.0625, %v809_v27  ;;  %v850_v45 = vmul.f32 0.0625, %v811_v13  ;;  %v974_v20 = vmul.f32 %v4169_v8, %v935_v54 }
 0x1d4   : > { %v3254_v21 = vpop.eup %3253  ;;  %3267 = vrsqrt.f32 %v880_v60  ;;  %v1037_v28 = vpack.c.bf16 %v1011_v35, %v1010_v32  ;;  %v975_v22 = vmul.f32 %v4169_v8, %v936_v36 }
 0x1d5   : > { %v3256_v29 = vpop.eup %3255  ;;  %v881_v34 = vadd.f32 1e-05, %v849_v6  ;;  %v882_v14 = vadd.f32 1e-05, %v850_v45  ;;  %v1013_v15 = vadd.f32 %v4176_v44, %v974_v20  ;;  %v937_v48 = vmul.f32 %v3254_v21, %v4044_v43 }
 0x1d6   : > { %2849 = vmatmul.mubr.bf16.gmra.mxu0 %v1037_v28  ;;  %v813_v30 = vpop.xlane.xlu1 %812  ;;  %v815_v42 = vpop.xlane.xlu0 %814  ;;  %v938_v23 = vmul.f32 %v3256_v29, %v4054_v53  ;;  %v1014_v53 = vadd.f32 %v4176_v44, %v975_v22 }
 0x1d7   : > { %3269 = vrsqrt.f32 %v881_v34  ;;  %v851_v51 = vmul.f32 0.0625, %v813_v30  ;;  %v852_v55 = vmul.f32 0.0625, %v815_v42  ;;  %v1038_v52 = vpack.c.bf16 %v1013_v15, %v1012_v38 }
 0x1d8   : > { %v3258_v33 = vpop.eup %3257  ;;  %3271 = vrsqrt.f32 %v882_v14  ;;  %v976_v0 = vmul.f32 %v4169_v8, %v937_v48  ;;  %v977_v16 = vmul.f32 %v4169_v8, %v938_v23  ;;  %v3192_v23 = vld [vmem:[#allocation7 + $0x30] sm:$0xff]  }
 0x1d9   : > { %v3260_v49 = vpop.eup %3259  ;;  %v883_v17 = vadd.f32 1e-05, %v851_v51  ;;  %v884_v43 = vadd.f32 1e-05, %v852_v55  ;;  %2852 = vmatprep.mubr.bf16.mxu0 %v1038_v52  ;;  %v939_v57 = vmul.f32 %v3258_v33, %v4058_v56 }
 0x1da   : > { %v817_v58 = vpop.xlane.xlu1 %816  ;;  %v819_v24 = vpop.xlane.xlu0 %818  ;;  %v1015_v59 = vadd.f32 %v4176_v44, %v976_v0  ;;  %v940_v25 = vmul.f32 %v3260_v49, %v4068_v2  ;;  %v1016_v19 = vadd.f32 %v4176_v44, %v977_v16 }
 0x1db   : > { %3273 = vrsqrt.f32 %v883_v17  ;;  %v853_v61 = vmul.f32 0.0625, %v817_v58  ;;  %v854_v62 = vmul.f32 0.0625, %v819_v24  ;;  %v978_v63 = vmul.f32 %v4169_v8, %v939_v57  ;;  %v3193_v17 = vld [vmem:[#allocation7 + $0x28] sm:$0xff]  }
 0x1dc   : > { %v3262_v1 = vpop.eup %3261  ;;  %3275 = vrsqrt.f32 %v884_v43  ;;  %v1039_v18 = vpack.c.bf16 %v1015_v59, %v1014_v53  ;;  %v979_v27 = vmul.f32 %v4169_v8, %v940_v25  ;;  %v3194_v25 = vld [vmem:[#allocation7 + $0x20] sm:$0xff]  }
 0x1dd   : > { %v3264_v4 = vpop.eup %3263  ;;  %v885_v56 = vadd.f32 1e-05, %v853_v61  ;;  %v886_v26 = vadd.f32 1e-05, %v854_v62  ;;  %v1017_v37 = vadd.f32 %v4176_v44, %v978_v63  ;;  %v941_v60 = vmul.f32 %v3262_v1, %v4072_v3 }
 0x1de   : > { %2853 = vmatmul.mubr.bf16.gmra.mxu0 %v1039_v18  ;;  %v821_v54 = vpop.xlane.xlu1 %820  ;;  %v823_v2 = vpop.xlane.xlu0 %822  ;;  %v942_v13 = vmul.f32 %v3264_v4, %v4082_v7  ;;  %v1018_v34 = vadd.f32 %v4176_v44, %v979_v27 }
 0x1df   : > { %3277 = vrsqrt.f32 %v885_v56  ;;  %v855_v32 = vmul.f32 0.0625, %v821_v54  ;;  %v856_v35 = vmul.f32 0.0625, %v823_v2  ;;  %v1040_v36 = vpack.c.bf16 %v1017_v37, %v1016_v19  ;;  %v3195_v56 = vld [vmem:[#allocation7 + $0x18] sm:$0xff]  }
 0x1e0   : > { %v3266_v6 = vpop.eup %3265  ;;  %3279 = vrsqrt.f32 %v886_v26  ;;  %v980_v45 = vmul.f32 %v4169_v8, %v941_v60  ;;  %v981_v20 = vmul.f32 %v4169_v8, %v942_v13 }
 0x1e1   : > { %v3268_v21 = vpop.eup %3267  ;;  %v887_v28 = vadd.f32 1e-05, %v855_v32  ;;  %v888_v3 = vadd.f32 1e-05, %v856_v35  ;;  %2856 = vmatprep.mubr.bf16.mxu1 %v1040_v36  ;;  %v943_v38 = vmul.f32 %v3266_v6, %v4086_v39  ;;  %v3196_v32 = vld [vmem:[#allocation7 + $0x10] sm:$0xff]  }
 0x1e2   : > { %v825_v29 = vpop.xlane.xlu1 %824  ;;  %v1019_v7 = vadd.f32 %v4176_v44, %v980_v45  ;;  %v944_v14 = vmul.f32 %v3268_v21, %v4096_v9  ;;  %v1020_v22 = vadd.f32 %v4176_v44, %v981_v20 }
 0x1e3   : > { %3281 = vrsqrt.f32 %v887_v28  ;;  %v857_v15 = vmul.f32 0.0625, %v825_v29  ;;  %v982_v48 = vmul.f32 %v4169_v8, %v943_v38  ;;  %v3199_v38 = vld [vmem:[#allocation8 + $0x38] sm:$0xff]   ;;  %v3200_v29 = vld [vmem:[#allocation8 + $0x30] sm:$0xff]  }
 0x1e4   : > { %v3270_v30 = vpop.eup %3269  ;;  %3283 = vrsqrt.f32 %v888_v3  ;;  %v1041_v42 = vpack.c.bf16 %v1019_v7, %v1018_v34  ;;  %v983_v33 = vmul.f32 %v4169_v8, %v944_v14  ;;  %v3197_v3 = vld [vmem:[#allocation7 + $0x8] sm:$0xff]   ;;  %2920 = vmatprep.subr.bf16.mxu0 %v3199_v38  ;;  %v3202_v34 = vld [vmem:[#allocation8 + $0x20] sm:$0xff]  }
 0x1e5   : > { %v3272_v51 = vpop.eup %3271  ;;  %v889_v55 = vadd.f32 1e-05, %v857_v15  ;;  %v1021_v39 = vadd.f32 %v4176_v44, %v982_v48  ;;  %v945_v52 = vmul.f32 %v3270_v30, %v4100_v50  ;;  %2921 = vmatpush3.bf16.msra.mxu0 %v3199_v38  ;;  %v4275_v48 = vld [vmem:[%s4931_s4] ss:$0 sm:$0xff] }
 0x1e6   : > { %2857 = vmatmul.mubr.bf16.vlgmr.msra.gmra.mxu1 %v1041_v42  ;;  %v946_v9 = vmul.f32 %v3272_v51, %v4110_v10  ;;  %v1022_v57 = vadd.f32 %v4176_v44, %v983_v33  ;;  %2922 = vmatprep.subr.bf16.mxu0 %v3200_v29 }
 0x1e7   : > { %3285 = vrsqrt.f32 %v889_v55  ;;  %v1042_v0 = vpack.c.bf16 %v1021_v39, %v1020_v22  ;;  %v984_v16 = vmul.f32 %v4169_v8, %v945_v52  ;;  %2873 = vmatpush3.bf16.msra.mxu1 %v4162_v31 }
 0x1e8   : > { %v3274_v49 = vpop.eup %3273  ;;  %2874 = vmatprep.subr.bf16.mxu1 %v3192_v23  ;;  %v985_v24 = vmul.f32 %v4169_v8, %v946_v9 }
 0x1e9   : > { %v3276_v43 = vpop.eup %3275  ;;  %2860 = vmatprep.mubr.bf16.mxu1 %v1042_v0  ;;  %v1023_v50 = vadd.f32 %v4176_v44, %v984_v16  ;;  %v947_v58 = vmul.f32 %v3274_v49, %v4114_v11  ;;  %2923 = vmatpush3.bf16.msra.mxu0 %v3200_v29 }
 0x1ea   : > { %v948_v10 = vmul.f32 %v3276_v43, %v4124_v5  ;;  %v1024_v62 = vadd.f32 %v4176_v44, %v985_v24 }
 0x1eb   : > { %v1043_v53 = vpack.c.bf16 %v1023_v50, %v1022_v57  ;;  %v986_v59 = vmul.f32 %v4169_v8, %v947_v58  ;;  %2875 = vmatpush3.bf16.msra.mxu1 %v3192_v23 }
 0x1ec   : > { %v3278_v31 = vpop.eup %3277  ;;  %2876 = vmatprep.subr.bf16.mxu1 %v3193_v17  ;;  %v987_v11 = vmul.f32 %v4169_v8, %v948_v10 }
 0x1ed   : > { %v3280_v61 = vpop.eup %3279  ;;  %v1025_v63 = vadd.f32 %v4176_v44, %v986_v59  ;;  %v949_v1 = vmul.f32 %v3278_v31, %v4128_v12 }
 0x1ee   : > { %2861 = vmatmul.mubr.bf16.gmra.mxu1 %v1043_v53  ;;  %v950_v18 = vmul.f32 %v3280_v61, %v4138_v40  ;;  %v1026_v37 = vadd.f32 %v4176_v44, %v987_v11 }
 0x1ef   : > { %v1044_v5 = vpack.c.bf16 %v1025_v63, %v1024_v62  ;;  %v988_v19 = vmul.f32 %v4169_v8, %v949_v1  ;;  %2877 = vmatpush3.bf16.msra.mxu1 %v3193_v17 }
 0x1f0   : > { %v3282_v4 = vpop.eup %3281  ;;  %2878 = vmatprep.subr.bf16.mxu1 %v3194_v25  ;;  %v989_v54 = vmul.f32 %v4169_v8, %v950_v18 }
 0x1f1   : > { %v3284_v26 = vpop.eup %3283  ;;  %2864 = vmatprep.mubr.bf16.mxu1 %v1044_v5  ;;  %v1027_v60 = vadd.f32 %v4176_v44, %v988_v19  ;;  %v951_v12 = vmul.f32 %v3282_v4, %v4142_v41 }
 0x1f2   : > { %v952_v2 = vmul.f32 %v3284_v26, %v4152_v46  ;;  %v1028_v35 = vadd.f32 %v4176_v44, %v989_v54 }
 0x1f3   : > { %v1045_v40 = vpack.c.bf16 %v1027_v60, %v1026_v37  ;;  %v990_v27 = vmul.f32 %v4169_v8, %v951_v12  ;;  %2879 = vmatpush3.bf16.msra.mxu1 %v3194_v25 }
 0x1f4   : > { %v3286_v13 = vpop.eup %3285  ;;  %2880 = vmatprep.subr.bf16.mxu1 %v3195_v56  ;;  %v991_v45 = vmul.f32 %v4169_v8, %v952_v2 }
 0x1f5   : > { %v1029_v36 = vadd.f32 %v4176_v44, %v990_v27  ;;  %v953_v6 = vmul.f32 %v3286_v13, %v4156_v47  ;;  %v3198_v47 = vld [vmem:[#allocation7] sm:$0xff]  }
 0x1f6   : > { %2865 = vmatmul.mubr.bf16.gmra.mxu1 %v1045_v40  ;;  %v1030_v46 = vadd.f32 %v4176_v44, %v991_v45 }
 0x1f7   : > { %v1046_v41 = vpack.c.bf16 %v1029_v36, %v1028_v35  ;;  %v992_v20 = vmul.f32 %v4169_v8, %v953_v6  ;;  %2881 = vmatpush3.bf16.msra.mxu1 %v3195_v56  ;;  %v3201_v8 = vld [vmem:[#allocation8 + $0x28] sm:$0xff]  }
 0x1f8   : > { %2882 = vmatprep.subr.bf16.mxu1 %v3196_v32  ;;  %2924 = vmatprep.subr.bf16.mxu0 %v3201_v8 }
 0x1f9   : > { %2868 = vmatprep.mubr.bf16.mxu1 %v1046_v41  ;;  %v1031_v21 = vadd.f32 %v4176_v44, %v992_v20  ;;  %2925 = vmatpush3.bf16.msra.mxu0 %v3201_v8  ;;  %v3203_v44 = vld [vmem:[#allocation8 + $0x18] sm:$0xff]  }
 0x1fa   : > { %2926 = vmatprep.subr.bf16.mxu0 %v3202_v34 }
 0x1fb   : > { %v1047_v28 = vpack.c.bf16 %v1031_v21, %v1030_v46  ;;  %2883 = vmatpush3.bf16.msra.mxu1 %v3196_v32 }
 0x1fc   : > { %2884 = vmatprep.subr.bf16.mxu1 %v3197_v3 }
 0x1fd   : > { %2927 = vmatpush3.bf16.msra.mxu0 %v3202_v34 }
 0x1fe   : > { %2869 = vmatmul.mubr.bf16.gmra.mxu1 %v1047_v28  ;;  %2928 = vmatprep.subr.bf16.mxu0 %v3203_v44 }
 0x1ff   : > { %2885 = vmatpush3.bf16.msra.mxu1 %v3197_v3 }
 0x200   : > { %2886 = vmatprep.subr.bf16.mxu1 %v3198_v47 }
 0x201   : > { %2929 = vmatpush3.bf16.msra.mxu0 %v3203_v44 }
 0x203   : > { %2887 = vmatpush3.bf16.msra.mxu1 %v3198_v47 }
 0x286   : > { %v2842_v7 = vpop.f32.mrf.mxu0 }
 0x287   : > { %v4287_v51 = vadd.f32 %v2842_v7, %v4275_v48 }
 0x288   : > { %v1153_v14 = vpop.f32.mrf.mxu0 }
 0x289   : > { %v4281_v22 = vadd.f32 %v4275_v48, %v1153_v14 }
 0x28a   : > { %v2843_v15 = vpop.f32.mrf.mxu0 }
 0x28b   : > { %v4278_v30 = vadd.f32 %v2843_v15, %v4275_v48 }
 0x28c   : > { %v1156_v42 = vpop.f32.mrf.mxu0 }
 0x28d   : > { %v4284_v23 = vadd.f32 %v4275_v48, %v1156_v42  ;;  %v1281_v52 = vpack.c.bf16 %v4278_v30, %v4287_v51 }
 0x28e   : > { %v2846_v55 = vpop.f32.mrf.mxu0 }
 0x28f   : > { %v1280_v39 = vpack.c.bf16 %v4284_v23, %v4281_v22  ;;  %v4303_v43 = vadd.f32 %v2846_v55, %v4275_v48 }
 0x290   : > { %v1169_v33 = vpop.f32.mrf.mxu0 }
 0x291   : > { %2888 = vmatprep.mubr.bf16.mxu1 %v1280_v39  ;;  %v4297_v49 = vadd.f32 %v4275_v48, %v1169_v33 }
 0x292   : > { %v2847_v9 = vpop.f32.mrf.mxu0  ;;  %2889 = vmatmul.mubr.bf16.vlgmr.msra.gmra.mxu1 %v1281_v52 }
 0x293   : > { %v4294_v0 = vadd.f32 %v2847_v9, %v4275_v48 }
 0x294   : > { %v1172_v16 = vpop.f32.mrf.mxu0 }
 0x295   : > { %v4300_v17 = vadd.f32 %v4275_v48, %v1172_v16  ;;  %v1283_v58 = vpack.c.bf16 %v4294_v0, %v4303_v43 }
 0x296   : > { %v2850_v57 = vpop.f32.mrf.mxu0 }
 0x297   : > { %v1282_v50 = vpack.c.bf16 %v4300_v17, %v4297_v49  ;;  %v4319_v61 = vadd.f32 %v2850_v57, %v4275_v48 }
 0x298   : > { %v1185_v24 = vpop.f32.mrf.mxu0 }
 0x299   : > { %2892 = vmatprep.mubr.bf16.mxu1 %v1282_v50  ;;  %v4313_v31 = vadd.f32 %v4275_v48, %v1185_v24 }
 0x29a   : > { %v2851_v10 = vpop.f32.mrf.mxu0  ;;  %2893 = vmatmul.mubr.bf16.gmra.mxu1 %v1283_v58 }
 0x29b   : > { %v4310_v53 = vadd.f32 %v2851_v10, %v4275_v48 }
 0x29c   : > { %v1188_v59 = vpop.f32.mrf.mxu0 }
 0x29d   : > { %v4316_v25 = vadd.f32 %v4275_v48, %v1188_v59  ;;  %v1285_v1 = vpack.c.bf16 %v4310_v53, %v4319_v61 }
 0x29e   : > { %v2854_v62 = vpop.f32.mrf.mxu0 }
 0x29f   : > { %v1284_v63 = vpack.c.bf16 %v4316_v25, %v4313_v31  ;;  %v4335_v26 = vadd.f32 %v2854_v62, %v4275_v48 }
 0x2a0   : > { %v1201_v11 = vpop.f32.mrf.mxu0 }
 0x2a1   : > { %2896 = vmatprep.mubr.bf16.mxu1 %v1284_v63  ;;  %v4329_v4 = vadd.f32 %v4275_v48, %v1201_v11  ;;  %v3204_v63 = vld [vmem:[#allocation8 + $0x10] sm:$0xff]   ;;  %v3206_v11 = vld [vmem:[#allocation8] sm:$0xff]  }
 0x2a2   : > { %v2855_v18 = vpop.f32.mrf.mxu0  ;;  %2897 = vmatmul.mubr.bf16.gmra.mxu1 %v1285_v1  ;;  %2930 = vmatprep.subr.bf16.mxu0 %v3204_v63  ;;  %v3205_v1 = vld [vmem:[#allocation8 + $0x8] sm:$0xff]  }
 0x2a3   : > { %v4326_v5 = vadd.f32 %v2855_v18, %v4275_v48  ;;  %2931 = vmatpush3.bf16.msra.mxu0 %v3204_v63  ;;  %v3207_v18 = vld [vmem:[#allocation10 + $0x38] sm:$0xff]  }
 0x2a4   : > { %v1204_v19 = vpop.f32.mrf.mxu0  ;;  %2932 = vmatprep.subr.bf16.mxu0 %v3205_v1  ;;  %2968 = vmatprep.subr.bf16.mxu1 %v3207_v18 }
 0x2a5   : > { %v4332_v56 = vadd.f32 %v4275_v48, %v1204_v19  ;;  %v1287_v12 = vpack.c.bf16 %v4326_v5, %v4335_v26  ;;  %2969 = vmatpush3.bf16.msra.mxu1 %v3207_v18  ;;  %v3209_v19 = vld [vmem:[#allocation10 + $0x28] sm:$0xff]  }
 0x2a6   : > { %v2858_v37 = vpop.f32.mrf.mxu1 }
 0x2a7   : > { %v1286_v60 = vpack.c.bf16 %v4332_v56, %v4329_v4  ;;  %v4351_v35 = vadd.f32 %v2858_v37, %v4275_v48  ;;  %2933 = vmatpush3.bf16.msra.mxu0 %v3205_v1  ;;  %v3210_v37 = vld [vmem:[#allocation10 + $0x20] sm:$0xff]  }
 0x2a8   : > { %v1217_v54 = vpop.f32.mrf.mxu1  ;;  %2934 = vmatprep.subr.bf16.mxu0 %v3206_v11 }
 0x2a9   : > { %2900 = vmatprep.mubr.bf16.mxu1 %v1286_v60  ;;  %v4345_v13 = vadd.f32 %v4275_v48, %v1217_v54  ;;  %v3211_v60 = vld [vmem:[#allocation10 + $0x18] sm:$0xff]   ;;  %v3213_v54 = vld [vmem:[#allocation10 + $0x8] sm:$0xff]  }
 0x2aa   : > { %v2859_v2 = vpop.f32.mrf.mxu1  ;;  %2901 = vmatmul.mubr.bf16.gmra.mxu1 %v1287_v12  ;;  %v3212_v12 = vld [vmem:[#allocation10 + $0x10] sm:$0xff]  }
 0x2ab   : > { %v4342_v40 = vadd.f32 %v2859_v2, %v4275_v48  ;;  %2935 = vmatpush3.bf16.msra.mxu0 %v3206_v11 }
 0x2ac   : > { %v1220_v27 = vpop.f32.mrf.mxu1 }
 0x2ad   : > { %v4348_v32 = vadd.f32 %v4275_v48, %v1220_v27  ;;  %v1289_v45 = vpack.c.bf16 %v4342_v40, %v4351_v35  ;;  %v4408_v27 = vld [vmem:[%s4933_s6] ss:$0 sm:$0xff] }
 0x2ae   : > { %v2862_v36 = vpop.f32.mrf.mxu1 }
 0x2af   : > { %v1288_v6 = vpack.c.bf16 %v4348_v32, %v4345_v13  ;;  %v4367_v47 = vadd.f32 %v2862_v36, %v4275_v48 }
 0x2b0   : > { %v1233_v41 = vpop.f32.mrf.mxu1 }
 0x2b1   : > { %2904 = vmatprep.mubr.bf16.mxu1 %v1288_v6  ;;  %v4361_v28 = vadd.f32 %v4275_v48, %v1233_v41 }
 0x2b2   : > { %v2863_v20 = vpop.f32.mrf.mxu1  ;;  %2905 = vmatmul.mubr.bf16.gmra.mxu1 %v1289_v45 }
 0x2b3   : > { %v4358_v46 = vadd.f32 %v2863_v20, %v4275_v48 }
 0x2b4   : > { %v1236_v21 = vpop.f32.mrf.mxu1 }
 0x2b5   : > { %v4364_v3 = vadd.f32 %v4275_v48, %v1236_v21  ;;  %v1291_v8 = vpack.c.bf16 %v4358_v46, %v4367_v47 }
 0x2b6   : > { %v2866_v38 = vpop.f32.mrf.mxu1 }
 0x2b7   : > { %v1290_v29 = vpack.c.bf16 %v4364_v3, %v4361_v28  ;;  %v4383_v55 = vadd.f32 %v2866_v38, %v4275_v48 }
 0x2b8   : > { %v1249_v34 = vpop.f32.mrf.mxu1 }
 0x2b9   : > { %2908 = vmatprep.mubr.bf16.mxu1 %v1290_v29  ;;  %v4377_v15 = vadd.f32 %v4275_v48, %v1249_v34 }
 0x2ba   : > { %v2867_v44 = vpop.f32.mrf.mxu1  ;;  %2909 = vmatmul.mubr.bf16.gmra.mxu1 %v1291_v8 }
 0x2bb   : > { %v4374_v7 = vadd.f32 %v2867_v44, %v4275_v48 }
 0x2bc   : > { %v1252_v14 = vpop.f32.mrf.mxu1 }
 0x2bd   : > { %v4380_v42 = vadd.f32 %v4275_v48, %v1252_v14  ;;  %v1293_v33 = vpack.c.bf16 %v4374_v7, %v4383_v55 }
 0x2be   : > { %v2870_v39 = vpop.f32.mrf.mxu1 }
 0x2bf   : > { %v1292_v52 = vpack.c.bf16 %v4380_v42, %v4377_v15  ;;  %v4399_v10 = vadd.f32 %v2870_v39, %v4275_v48 }
 0x2c0   : > { %v1265_v9 = vpop.f32.mrf.mxu1 }
 0x2c1   : > { %2912 = vmatprep.mubr.bf16.mxu1 %v1292_v52  ;;  %v4393_v58 = vadd.f32 %v4275_v48, %v1265_v9 }
 0x2c2   : > { %v2871_v16 = vpop.f32.mrf.mxu1  ;;  %2913 = vmatmul.mubr.bf16.gmra.mxu1 %v1293_v33 }
 0x2c3   : > { %v4390_v57 = vadd.f32 %v2871_v16, %v4275_v48 }
 0x2c4   : > { %v1268_v50 = vpop.f32.mrf.mxu1 }
 0x2c5   : > { %v4396_v24 = vadd.f32 %v4275_v48, %v1268_v50  ;;  %v1295_v62 = vpack.c.bf16 %v4390_v57, %v4399_v10  ;;  %v3208_v48 = vld [vmem:[#allocation10 + $0x30] sm:$0xff]  }
 0x2c6   : > { %2970 = vmatprep.subr.bf16.mxu1 %v3208_v48 }
 0x2c7   : > { %v1294_v59 = vpack.c.bf16 %v4396_v24, %v4393_v58  ;;  %2971 = vmatpush3.bf16.msra.mxu1 %v3208_v48 }
 0x2c8   : > { %2972 = vmatprep.subr.bf16.mxu1 %v3209_v19 }
 0x2c9   : > { %2916 = vmatprep.mubr.bf16.mxu1 %v1294_v59 }
 0x2ca   : > { %2917 = vmatmul.mubr.bf16.gmra.mxu1 %v1295_v62 }
 0x2cb   : > { %2973 = vmatpush3.bf16.msra.mxu1 %v3209_v19 }
 0x2cc   : > { %2974 = vmatprep.subr.bf16.mxu1 %v3210_v37 }
 0x2cf   : > { %2975 = vmatpush3.bf16.msra.mxu1 %v3210_v37 }
 0x2d0   : > { %2976 = vmatprep.subr.bf16.mxu1 %v3211_v60 }
 0x2d3   : > { %2977 = vmatpush3.bf16.msra.mxu1 %v3211_v60 }
 0x2d4   : > { %2978 = vmatprep.subr.bf16.mxu1 %v3212_v12 }
 0x2d7   : > { %2979 = vmatpush3.bf16.msra.mxu1 %v3212_v12 }
 0x2d8   : > { %2980 = vmatprep.subr.bf16.mxu1 %v3213_v54 }
 0x2db   : > { %2981 = vmatpush3.bf16.msra.mxu1 %v3213_v54 }
 0x352   : > { %v2890_v2 = vpop.f32.mrf.mxu1 }
 0x353   : > { %v1410_v45 = vadd.f32 %v2890_v2, %v4408_v27 }
 0x354   : > { %v1401_v36 = vpop.f32.mrf.mxu1 }
 0x355   : > { %v1402_v6 = vadd.f32 %v4408_v27, %v1401_v36  ;;  %v1530_v34 = vmax.f32 %v1410_v45, 0.0 }
 0x356   : > { %v2891_v41 = vpop.f32.mrf.mxu1 }
 0x357   : > { %v1413_v20 = vadd.f32 %v2891_v41, %v4408_v27  ;;  %v1528_v38 = vmax.f32 %v1402_v6, 0.0  ;;  %v4425_v50 = vadd.f32 %v1530_v34, %v4287_v51 }
 0x358   : > { %v1404_v21 = vpop.f32.mrf.mxu1 }
 0x359   : > { %v1531_v29 = vmax.f32 %v1413_v20, 0.0  ;;  %v1405_v8 = vadd.f32 %v4408_v27, %v1404_v21  ;;  %v4418_v33 = vadd.f32 %v1528_v38, %v4281_v22 }
 0x35a   : > { %v2894_v44 = vpop.f32.mrf.mxu1 }
 0x35b   : > { %v1529_v14 = vmax.f32 %v1405_v8, 0.0  ;;  %v4415_v39 = vadd.f32 %v1531_v29, %v4278_v30  ;;  %v1426_v59 = vadd.f32 %v2894_v44, %v4408_v27 }
 0x35c   : > { %v1417_v52 = vpop.f32.mrf.mxu1 }
 0x35d   : > { %v4421_v9 = vadd.f32 %v1529_v14, %v4284_v23  ;;  %v1418_v16 = vadd.f32 %v4408_v27, %v1417_v52  ;;  %v1593_v22 = vpack.c.bf16 %v4415_v39, %v4425_v50  ;;  %v1534_v48 = vmax.f32 %v1426_v59, 0.0 }
 0x35e   : > { %v2895_v62 = vpop.f32.mrf.mxu1 }
 0x35f   : > { %v1429_v63 = vadd.f32 %v2895_v62, %v4408_v27  ;;  %v1592_v30 = vpack.c.bf16 %v4421_v9, %v4418_v33  ;;  %v1532_v11 = vmax.f32 %v1418_v16, 0.0  ;;  %v4445_v36 = vadd.f32 %v1534_v48, %v4303_v43 }
 0x360   : > { %v1420_v1 = vpop.f32.mrf.mxu1 }
 0x361   : > { %v1535_v23 = vmax.f32 %v1429_v63, 0.0  ;;  %v1421_v18 = vadd.f32 %v4408_v27, %v1420_v1  ;;  %2936 = vmatprep.mubr.bf16.mxu0 %v1592_v30  ;;  %v4438_v12 = vadd.f32 %v1532_v11, %v4297_v49 }
 0x362   : > { %v2898_v51 = vpop.f32.mrf.mxu1  ;;  %2937 = vmatmul.mubr.bf16.vlgmr.msra.gmra.mxu0 %v1593_v22 }
 0x363   : > { %v1533_v19 = vmax.f32 %v1421_v18, 0.0  ;;  %v4435_v37 = vadd.f32 %v1535_v23, %v4294_v0  ;;  %v1442_v6 = vadd.f32 %v2898_v51, %v4408_v27 }
 0x364   : > { %v1433_v60 = vpop.f32.mrf.mxu1 }
 0x365   : > { %v4441_v54 = vadd.f32 %v1533_v19, %v4300_v17  ;;  %v1434_v2 = vadd.f32 %v4408_v27, %v1433_v60  ;;  %v1595_v49 = vpack.c.bf16 %v4435_v37, %v4445_v36  ;;  %v1538_v29 = vmax.f32 %v1442_v6, 0.0 }
 0x366   : > { %v2899_v45 = vpop.f32.mrf.mxu1 }
 0x367   : > { %v1445_v41 = vadd.f32 %v2899_v45, %v4408_v27  ;;  %v1594_v0 = vpack.c.bf16 %v4441_v54, %v4438_v12  ;;  %v1536_v21 = vmax.f32 %v1434_v2, 0.0  ;;  %v4465_v59 = vadd.f32 %v1538_v29, %v4319_v61 }
 0x368   : > { %v1436_v20 = vpop.f32.mrf.mxu1 }
 0x369   : > { %v1539_v17 = vmax.f32 %v1445_v41, 0.0  ;;  %v1437_v38 = vadd.f32 %v4408_v27, %v1436_v20  ;;  %2940 = vmatprep.mubr.bf16.mxu0 %v1594_v0  ;;  %v4458_v14 = vadd.f32 %v1536_v21, %v4313_v31 }
 0x36a   : > { %v2902_v43 = vpop.f32.mrf.mxu1  ;;  %2941 = vmatmul.mubr.bf16.gmra.mxu0 %v1595_v49 }
 0x36b   : > { %v1537_v8 = vmax.f32 %v1437_v38, 0.0  ;;  %v4455_v34 = vadd.f32 %v1539_v17, %v4310_v53  ;;  %v1458_v62 = vadd.f32 %v2902_v43, %v4408_v27 }
 0x36c   : > { %v1449_v44 = vpop.f32.mrf.mxu1 }
 0x36d   : > { %v4461_v52 = vadd.f32 %v1537_v8, %v4316_v25  ;;  %v1450_v16 = vadd.f32 %v4408_v27, %v1449_v44  ;;  %v1597_v31 = vpack.c.bf16 %v4455_v34, %v4465_v59  ;;  %v1542_v23 = vmax.f32 %v1458_v62, 0.0 }
 0x36e   : > { %v2903_v63 = vpop.f32.mrf.mxu1 }
 0x36f   : > { %v1461_v30 = vadd.f32 %v2903_v63, %v4408_v27  ;;  %v1596_v53 = vpack.c.bf16 %v4461_v52, %v4458_v14  ;;  %v1540_v1 = vmax.f32 %v1450_v16, 0.0  ;;  %v4485_v6 = vadd.f32 %v1542_v23, %v4335_v26 }
 0x370   : > { %v1452_v22 = vpop.f32.mrf.mxu1 }
 0x371   : > { %v1543_v25 = vmax.f32 %v1461_v30, 0.0  ;;  %v1453_v11 = vadd.f32 %v4408_v27, %v1452_v22  ;;  %2944 = vmatprep.mubr.bf16.mxu0 %v1596_v53  ;;  %v4478_v19 = vadd.f32 %v1540_v1, %v4329_v4 }
 0x372   : > { %v2906_v61 = vpop.f32.mrf.mxu1  ;;  %2945 = vmatmul.mubr.bf16.gmra.mxu0 %v1597_v31 }
 0x373   : > { %v1541_v18 = vmax.f32 %v1453_v11, 0.0  ;;  %v4475_v48 = vadd.f32 %v1543_v25, %v4326_v5  ;;  %v1474_v45 = vadd.f32 %v2906_v61, %v4408_v27 }
 0x374   : > { %v1465_v51 = vpop.f32.mrf.mxu1 }
 0x375   : > { %v4481_v60 = vadd.f32 %v1541_v18, %v4332_v56  ;;  %v1466_v2 = vadd.f32 %v4408_v27, %v1465_v51  ;;  %v1599_v4 = vpack.c.bf16 %v4475_v48, %v4485_v6  ;;  %v1546_v17 = vmax.f32 %v1474_v45, 0.0 }
 0x376   : > { %v2907_v41 = vpop.f32.mrf.mxu1 }
 0x377   : > { %v1477_v0 = vadd.f32 %v2907_v41, %v4408_v27  ;;  %v1598_v5 = vpack.c.bf16 %v4481_v60, %v4478_v19  ;;  %v1544_v49 = vmax.f32 %v1466_v2, 0.0  ;;  %v4505_v62 = vadd.f32 %v1546_v17, %v4351_v35 }
 0x378   : > { %v1468_v20 = vpop.f32.mrf.mxu1 }
 0x379   : > { %v1547_v56 = vmax.f32 %v1477_v0, 0.0  ;;  %v1469_v21 = vadd.f32 %v4408_v27, %v1468_v20  ;;  %2948 = vmatprep.mubr.bf16.mxu0 %v1598_v5  ;;  %v4498_v8 = vadd.f32 %v1544_v49, %v4345_v13 }
 0x37a   : > { %v2910_v26 = vpop.f32.mrf.mxu1  ;;  %2949 = vmatmul.mubr.bf16.gmra.mxu0 %v1599_v4 }
 0x37b   : > { %v1545_v38 = vmax.f32 %v1469_v21, 0.0  ;;  %v4495_v29 = vadd.f32 %v1547_v56, %v4342_v40  ;;  %v1490_v63 = vadd.f32 %v2910_v26, %v4408_v27 }
 0x37c   : > { %v1481_v43 = vpop.f32.mrf.mxu1 }
 0x37d   : > { %v4501_v44 = vadd.f32 %v1545_v38, %v4348_v32  ;;  %v1482_v16 = vadd.f32 %v4408_v27, %v1481_v43  ;;  %v1601_v13 = vpack.c.bf16 %v4495_v29, %v4505_v62  ;;  %v1550_v25 = vmax.f32 %v1490_v63, 0.0 }
 0x37e   : > { %v2911_v30 = vpop.f32.mrf.mxu1 }
 0x37f   : > { %v1493_v53 = vadd.f32 %v2911_v30, %v4408_v27  ;;  %v1600_v40 = vpack.c.bf16 %v4501_v44, %v4498_v8  ;;  %v1548_v31 = vmax.f32 %v1482_v16, 0.0  ;;  %v4525_v45 = vadd.f32 %v1550_v25, %v4367_v47 }
 0x380   : > { %v1484_v22 = vpop.f32.mrf.mxu1 }
 0x381   : > { %v1551_v32 = vmax.f32 %v1493_v53, 0.0  ;;  %v1485_v1 = vadd.f32 %v4408_v27, %v1484_v22  ;;  %2952 = vmatprep.mubr.bf16.mxu0 %v1600_v40  ;;  %v4518_v18 = vadd.f32 %v1548_v31, %v4361_v28 }
 0x382   : > { %v2914_v35 = vpop.f32.mrf.mxu1  ;;  %2953 = vmatmul.mubr.bf16.gmra.mxu0 %v1601_v13 }
 0x383   : > { %v1549_v11 = vmax.f32 %v1485_v1, 0.0  ;;  %v4515_v23 = vadd.f32 %v1551_v32, %v4358_v46  ;;  %v1506_v41 = vadd.f32 %v2914_v35, %v4408_v27 }
 0x384   : > { %v1497_v61 = vpop.f32.mrf.mxu1 }
 0x385   : > { %v4521_v51 = vadd.f32 %v1549_v11, %v4364_v3  ;;  %v1498_v2 = vadd.f32 %v4408_v27, %v1497_v61  ;;  %v1603_v28 = vpack.c.bf16 %v4515_v23, %v4525_v45  ;;  %v1554_v56 = vmax.f32 %v1506_v41, 0.0  ;;  %v3219_v41 = vld [vmem:[#allocation11 + $0x18] sm:$0xff]  }
 0x386   : > { %v2915_v0 = vpop.f32.mrf.mxu1 }
 0x387   : > { %v1509_v5 = vadd.f32 %v2915_v0, %v4408_v27  ;;  %v1602_v46 = vpack.c.bf16 %v4521_v51, %v4518_v18  ;;  %v1552_v4 = vmax.f32 %v1498_v2, 0.0  ;;  %v4545_v63 = vadd.f32 %v1554_v56, %v4383_v55  ;;  %v3214_v2 = vld [vmem:[#allocation10] sm:$0xff]   ;;  %v3220_v0 = vld [vmem:[#allocation11 + $0x10] sm:$0xff]  }
 0x388   : > { %v1500_v20 = vpop.f32.mrf.mxu1  ;;  %2982 = vmatprep.subr.bf16.mxu1 %v3214_v2 }
 0x389   : > { %v1555_v3 = vmax.f32 %v1509_v5, 0.0  ;;  %v1501_v49 = vadd.f32 %v4408_v27, %v1500_v20  ;;  %2956 = vmatprep.mubr.bf16.mxu0 %v1602_v46  ;;  %v4538_v38 = vadd.f32 %v1552_v4, %v4377_v15  ;;  %2983 = vmatpush3.bf16.msra.mxu1 %v3214_v2  ;;  %v3221_v5 = vld [vmem:[#allocation11 + $0x8] sm:$0xff]   ;;  %v4573_v20 = vld [vmem:[%s4935_s8] ss:$0 sm:$0xff] }
 0x38a   : > { %v2918_v47 = vpop.f32.mrf.mxu1  ;;  %2957 = vmatmul.mubr.bf16.gmra.mxu0 %v1603_v28 }
 0x38b   : > { %v1553_v21 = vmax.f32 %v1501_v49, 0.0  ;;  %v4535_v17 = vadd.f32 %v1555_v3, %v4374_v7  ;;  %v1522_v30 = vadd.f32 %v2918_v47, %v4408_v27 }
 0x38c   : > { %v1513_v26 = vpop.f32.mrf.mxu1 }
 0x38d   : > { %v4541_v43 = vadd.f32 %v1553_v21, %v4380_v42  ;;  %v1514_v16 = vadd.f32 %v4408_v27, %v1513_v26  ;;  %v1605_v15 = vpack.c.bf16 %v4535_v17, %v4545_v63  ;;  %v1558_v32 = vmax.f32 %v1522_v30, 0.0 }
 0x38e   : > { %v2919_v53 = vpop.f32.mrf.mxu1 }
 0x38f   : > { %v1525_v40 = vadd.f32 %v2919_v53, %v4408_v27  ;;  %v1604_v7 = vpack.c.bf16 %v4541_v43, %v4538_v38  ;;  %v1556_v13 = vmax.f32 %v1514_v16, 0.0  ;;  %v4564_v11 = vadd.f32 %v1558_v32, %v4399_v10  ;;  %v3218_v10 = vld [vmem:[#allocation11 + $0x20] sm:$0xff]  }
 0x390   : > { %v1516_v22 = vpop.f32.mrf.mxu1 }
 0x391   : > { %v1559_v42 = vmax.f32 %v1525_v40, 0.0  ;;  %v1517_v31 = vadd.f32 %v4408_v27, %v1516_v22  ;;  %2960 = vmatprep.mubr.bf16.mxu0 %v1604_v7  ;;  %v4558_v25 = vadd.f32 %v1556_v13, %v4393_v58  ;;  %v3216_v58 = vld [vmem:[#allocation11 + $0x30] sm:$0xff]  }
 0x392   : > { %2961 = vmatmul.mubr.bf16.gmra.mxu0 %v1605_v15 }
 0x393   : > { %v1557_v55 = vmax.f32 %v1517_v31, 0.0  ;;  %v4555_v1 = vadd.f32 %v1559_v42, %v4390_v57  ;;  %v3215_v57 = vld [vmem:[#allocation11 + $0x38] sm:$0xff]  }
 0x394   : > { %3016 = vmatprep.subr.bf16.mxu0 %v3215_v57 }
 0x395   : > { %v4561_v35 = vadd.f32 %v1557_v55, %v4396_v24  ;;  %v1607_v27 = vpack.c.bf16 %v4555_v1, %v4564_v11  ;;  %3017 = vmatpush3.bf16.msra.mxu0 %v3215_v57  ;;  %v3217_v24 = vld [vmem:[#allocation11 + $0x28] sm:$0xff]  }
 0x396   : > { %3018 = vmatprep.subr.bf16.mxu0 %v3216_v58 }
 0x397   : > { %v1606_v61 = vpack.c.bf16 %v4561_v35, %v4558_v25 }
 0x399   : > { %2964 = vmatprep.mubr.bf16.mxu0 %v1606_v61  ;;  %3019 = vmatpush3.bf16.msra.mxu0 %v3216_v58 }
 0x39a   : > { %2965 = vmatmul.mubr.bf16.gmra.mxu0 %v1607_v27  ;;  %3020 = vmatprep.subr.bf16.mxu0 %v3217_v24 }
 0x39d   : > { %3021 = vmatpush3.bf16.msra.mxu0 %v3217_v24 }
 0x39e   : > { %3022 = vmatprep.subr.bf16.mxu0 %v3218_v10 }
 0x3a1   : > { %3023 = vmatpush3.bf16.msra.mxu0 %v3218_v10 }
 0x3a2   : > { %3024 = vmatprep.subr.bf16.mxu0 %v3219_v41 }
 0x3a5   : > { %3025 = vmatpush3.bf16.msra.mxu0 %v3219_v41 }
 0x3a6   : > { %3026 = vmatprep.subr.bf16.mxu0 %v3220_v0 }
 0x3a9   : > { %3027 = vmatpush3.bf16.msra.mxu0 %v3220_v0 }
 0x3aa   : > { %3028 = vmatprep.subr.bf16.mxu0 %v3221_v5 }
 0x3ad   : > { %3029 = vmatpush3.bf16.msra.mxu0 %v3221_v5 }
 0x422   : > { %v2938_v46 = vpop.f32.mrf.mxu0 }
 0x423   : > { %v1722_v3 = vadd.f32 %v2938_v46, %v4573_v20 }
 0x424   : > { %v1713_v28 = vpop.f32.mrf.mxu0 }
 0x425   : > { %v1714_v4 = vadd.f32 %v4573_v20, %v1713_v28  ;;  %v1842_v30 = vmax.f32 %v1722_v3, 0.0 }
 0x426   : > { %v2939_v49 = vpop.f32.mrf.mxu0 }
 0x427   : > { %v1725_v56 = vadd.f32 %v2939_v49, %v4573_v20  ;;  %v1840_v21 = vmax.f32 %v1714_v4, 0.0  ;;  %v4590_v31 = vadd.f32 %v1842_v30, %v4425_v50 }
 0x428   : > { %v1716_v47 = vpop.f32.mrf.mxu0 }
 0x429   : > { %v1843_v26 = vmax.f32 %v1725_v56, 0.0  ;;  %v1717_v16 = vadd.f32 %v4573_v20, %v1716_v47  ;;  %v4583_v15 = vadd.f32 %v1840_v21, %v4418_v33 }
 0x42a   : > { %v2942_v53 = vpop.f32.mrf.mxu0 }
 0x42b   : > { %v1841_v40 = vmax.f32 %v1717_v16, 0.0  ;;  %v4580_v7 = vadd.f32 %v1843_v26, %v4415_v39  ;;  %v1738_v32 = vadd.f32 %v2942_v53, %v4573_v20 }
 0x42c   : > { %v1729_v22 = vpop.f32.mrf.mxu0 }
 0x42d   : > { %v4586_v13 = vadd.f32 %v1841_v40, %v4421_v9  ;;  %v1730_v42 = vadd.f32 %v4573_v20, %v1729_v22  ;;  %v1905_v33 = vpack.c.bf16 %v4580_v7, %v4590_v31  ;;  %v1846_v58 = vmax.f32 %v1738_v32, 0.0 }
 0x42e   : > { %v2943_v55 = vpop.f32.mrf.mxu0 }
 0x42f   : > { %v1741_v61 = vadd.f32 %v2943_v55, %v4573_v20  ;;  %v1904_v39 = vpack.c.bf16 %v4586_v13, %v4583_v15  ;;  %v1844_v2 = vmax.f32 %v1730_v42, 0.0  ;;  %v4610_v28 = vadd.f32 %v1846_v58, %v4445_v36 }
 0x430   : > { %v1732_v27 = vpop.f32.mrf.mxu0 }
 0x431   : > { %v1847_v9 = vmax.f32 %v1741_v61, 0.0  ;;  %v1733_v57 = vadd.f32 %v4573_v20, %v1732_v27  ;;  %2984 = vmatprep.mubr.bf16.mxu1 %v1904_v39  ;;  %v4603_v0 = vadd.f32 %v1844_v2, %v4438_v12 }
 0x432   : > { %v2946_v50 = vpop.f32.mrf.mxu0  ;;  %2985 = vmatmul.mubr.bf16.vlgmr.msra.gmra.mxu1 %v1905_v33 }
 0x433   : > { %v1845_v24 = vmax.f32 %v1733_v57, 0.0  ;;  %v4600_v10 = vadd.f32 %v1847_v9, %v4435_v37  ;;  %v1754_v4 = vadd.f32 %v2946_v50, %v4573_v20 }
 0x434   : > { %v1745_v41 = vpop.f32.mrf.mxu0 }
 0x435   : > { %v4606_v5 = vadd.f32 %v1845_v24, %v4441_v54  ;;  %v1746_v46 = vadd.f32 %v4573_v20, %v1745_v41  ;;  %v1907_v12 = vpack.c.bf16 %v4600_v10, %v4610_v28  ;;  %v1850_v26 = vmax.f32 %v1754_v4, 0.0 }
 0x436   : > { %v2947_v3 = vpop.f32.mrf.mxu0 }
 0x437   : > { %v1757_v49 = vadd.f32 %v2947_v3, %v4573_v20  ;;  %v1906_v37 = vpack.c.bf16 %v4606_v5, %v4603_v0  ;;  %v1848_v47 = vmax.f32 %v1746_v46, 0.0  ;;  %v4630_v32 = vadd.f32 %v1850_v26, %v4465_v59 }
 0x438   : > { %v1748_v56 = vpop.f32.mrf.mxu0 }
 0x439   : > { %v1851_v54 = vmax.f32 %v1757_v49, 0.0  ;;  %v1749_v21 = vadd.f32 %v4573_v20, %v1748_v56  ;;  %2988 = vmatprep.mubr.bf16.mxu1 %v1906_v37  ;;  %v4623_v40 = vadd.f32 %v1848_v47, %v4458_v14 }
 0x43a   : > { %v2950_v36 = vpop.f32.mrf.mxu0  ;;  %2989 = vmatmul.mubr.bf16.gmra.mxu1 %v1907_v12 }
 0x43b   : > { %v1849_v16 = vmax.f32 %v1749_v21, 0.0  ;;  %v4620_v30 = vadd.f32 %v1851_v54, %v4455_v34  ;;  %v1770_v55 = vadd.f32 %v2950_v36, %v4573_v20 }
 0x43c   : > { %v1761_v53 = vpop.f32.mrf.mxu0 }
 0x43d   : > { %v4626_v22 = vadd.f32 %v1849_v16, %v4461_v52  ;;  %v1762_v42 = vadd.f32 %v4573_v20, %v1761_v53  ;;  %v1909_v14 = vpack.c.bf16 %v4620_v30, %v4630_v32  ;;  %v1854_v9 = vmax.f32 %v1770_v55, 0.0 }
 0x43e   : > { %v2951_v61 = vpop.f32.mrf.mxu0 }
 0x43f   : > { %v1773_v39 = vadd.f32 %v2951_v61, %v4573_v20  ;;  %v1908_v34 = vpack.c.bf16 %v4626_v22, %v4623_v40  ;;  %v1852_v27 = vmax.f32 %v1762_v42, 0.0  ;;  %v4650_v4 = vadd.f32 %v1854_v9, %v4485_v6 }
 0x440   : > { %v1764_v33 = vpop.f32.mrf.mxu0 }
 0x441   : > { %v1855_v52 = vmax.f32 %v1773_v39, 0.0  ;;  %v1765_v2 = vadd.f32 %v4573_v20, %v1764_v33  ;;  %2992 = vmatprep.mubr.bf16.mxu1 %v1908_v34  ;;  %v4643_v24 = vadd.f32 %v1852_v27, %v4478_v19 }
 0x442   : > { %v2954_v59 = vpop.f32.mrf.mxu0  ;;  %2993 = vmatmul.mubr.bf16.gmra.mxu1 %v1909_v14 }
 0x443   : > { %v1853_v57 = vmax.f32 %v1765_v2, 0.0  ;;  %v4640_v58 = vadd.f32 %v1855_v52, %v4475_v48  ;;  %v1786_v3 = vadd.f32 %v2954_v59, %v4573_v20 }
 0x444   : > { %v1777_v50 = vpop.f32.mrf.mxu0 }
 0x445   : > { %v4646_v41 = vadd.f32 %v1853_v57, %v4481_v60  ;;  %v1778_v46 = vadd.f32 %v4573_v20, %v1777_v50  ;;  %v1911_v19 = vpack.c.bf16 %v4640_v58, %v4650_v4  ;;  %v1858_v54 = vmax.f32 %v1786_v3, 0.0 }
 0x446   : > { %v2955_v49 = vpop.f32.mrf.mxu0 }
 0x447   : > { %v1789_v37 = vadd.f32 %v2955_v49, %v4573_v20  ;;  %v1910_v48 = vpack.c.bf16 %v4646_v41, %v4643_v24  ;;  %v1856_v12 = vmax.f32 %v1778_v46, 0.0  ;;  %v4670_v55 = vadd.f32 %v1858_v54, %v4505_v62 }
 0x448   : > { %v1780_v56 = vpop.f32.mrf.mxu0 }
 0x449   : > { %v1859_v60 = vmax.f32 %v1789_v37, 0.0  ;;  %v1781_v47 = vadd.f32 %v4573_v20, %v1780_v56  ;;  %2996 = vmatprep.mubr.bf16.mxu1 %v1910_v48  ;;  %v4663_v16 = vadd.f32 %v1856_v12, %v4498_v8 }
 0x44a   : > { %v2958_v6 = vpop.f32.mrf.mxu0  ;;  %2997 = vmatmul.mubr.bf16.gmra.mxu1 %v1911_v19 }
 0x44b   : > { %v1857_v21 = vmax.f32 %v1781_v47, 0.0  ;;  %v4660_v26 = vadd.f32 %v1859_v60, %v4495_v29  ;;  %v1802_v61 = vadd.f32 %v2958_v6, %v4573_v20 }
 0x44c   : > { %v1793_v36 = vpop.f32.mrf.mxu0 }
 0x44d   : > { %v4666_v53 = vadd.f32 %v1857_v21, %v4501_v44  ;;  %v1794_v42 = vadd.f32 %v4573_v20, %v1793_v36  ;;  %v1913_v8 = vpack.c.bf16 %v4660_v26, %v4670_v55  ;;  %v1862_v52 = vmax.f32 %v1802_v61, 0.0 }
 0x44e   : > { %v2959_v39 = vpop.f32.mrf.mxu0 }
 0x44f   : > { %v1805_v34 = vadd.f32 %v2959_v39, %v4573_v20  ;;  %v1912_v29 = vpack.c.bf16 %v4666_v53, %v4663_v16  ;;  %v1860_v14 = vmax.f32 %v1794_v42, 0.0  ;;  %v4690_v3 = vadd.f32 %v1862_v52, %v4525_v45 }
 0x450   : > { %v1796_v33 = vpop.f32.mrf.mxu0 }
 0x451   : > { %v1863_v44 = vmax.f32 %v1805_v34, 0.0  ;;  %v1797_v27 = vadd.f32 %v4573_v20, %v1796_v33  ;;  %3000 = vmatprep.mubr.bf16.mxu1 %v1912_v29  ;;  %v4683_v57 = vadd.f32 %v1860_v14, %v4518_v18 }
 0x452   : > { %v2962_v62 = vpop.f32.mrf.mxu0  ;;  %3001 = vmatmul.mubr.bf16.gmra.mxu1 %v1913_v8 }
 0x453   : > { %v1861_v2 = vmax.f32 %v1797_v27, 0.0  ;;  %v4680_v9 = vadd.f32 %v1863_v44, %v4515_v23  ;;  %v1818_v49 = vadd.f32 %v2962_v62, %v4573_v20 }
 0x454   : > { %v1809_v59 = vpop.f32.mrf.mxu0 }
 0x455   : > { %v4686_v50 = vadd.f32 %v1861_v2, %v4521_v51  ;;  %v1810_v46 = vadd.f32 %v4573_v20, %v1809_v59  ;;  %v1915_v18 = vpack.c.bf16 %v4680_v9, %v4690_v3  ;;  %v1866_v60 = vmax.f32 %v1818_v49, 0.0 }
 0x456   : > { %v2963_v37 = vpop.f32.mrf.mxu0 }
 0x457   : > { %v1821_v48 = vadd.f32 %v2963_v37, %v4573_v20  ;;  %v1914_v23 = vpack.c.bf16 %v4686_v50, %v4683_v57  ;;  %v1864_v19 = vmax.f32 %v1810_v46, 0.0  ;;  %v4710_v61 = vadd.f32 %v1866_v60, %v4545_v63  ;;  %v3222_v46 = vld [vmem:[#allocation11] sm:$0xff]  }
 0x458   : > { %v1812_v56 = vpop.f32.mrf.mxu0  ;;  %3030 = vmatprep.subr.bf16.mxu0 %v3222_v46 }
 0x459   : > { %v1867_v51 = vmax.f32 %v1821_v48, 0.0  ;;  %v1813_v12 = vadd.f32 %v4573_v20, %v1812_v56  ;;  %3004 = vmatprep.mubr.bf16.mxu1 %v1914_v23  ;;  %v4703_v21 = vadd.f32 %v1864_v19, %v4538_v38  ;;  %3031 = vmatpush3.bf16.msra.mxu0 %v3222_v46 }
 0x45a   : > { %v2966_v45 = vpop.f32.mrf.mxu0  ;;  %3005 = vmatmul.mubr.bf16.gmra.mxu1 %v1915_v18 }
 0x45b   : > { %v1865_v47 = vmax.f32 %v1813_v12, 0.0  ;;  %v4700_v54 = vadd.f32 %v1867_v51, %v4535_v17  ;;  %v1834_v39 = vadd.f32 %v2966_v45, %v4573_v20 }
 0x45c   : > { %v1825_v6 = vpop.f32.mrf.mxu0 }
 0x45d   : > { %v4706_v36 = vadd.f32 %v1865_v47, %v4541_v43  ;;  %v1826_v42 = vadd.f32 %v4573_v20, %v1825_v6  ;;  %v1917_v38 = vpack.c.bf16 %v4700_v54, %v4710_v61  ;;  %v1870_v44 = vmax.f32 %v1834_v39, 0.0 }
 0x45e   : > { %v2967_v34 = vpop.f32.mrf.mxu0 }
 0x45f   : > { %v1837_v29 = vadd.f32 %v2967_v34, %v4573_v20  ;;  %v1916_v17 = vpack.c.bf16 %v4706_v36, %v4703_v21  ;;  %v1868_v8 = vmax.f32 %v1826_v42, 0.0  ;;  %v4729_v2 = vadd.f32 %v1870_v44, %v4564_v11 }
 0x460   : > { %v1828_v33 = vpop.f32.mrf.mxu0 }
 0x461   : > { %v1871_v43 = vmax.f32 %v1837_v29, 0.0  ;;  %v1829_v14 = vadd.f32 %v4573_v20, %v1828_v33  ;;  %3008 = vmatprep.mubr.bf16.mxu1 %v1916_v17  ;;  %v4723_v52 = vadd.f32 %v1868_v8, %v4558_v25  ;;  %v4738_v25 = vld [vmem:[%s4937_s10] ss:$0 sm:$0xff] }
 0x462   : > { %3009 = vmatmul.mubr.bf16.gmra.mxu1 %v1917_v38 }
 0x463   : > { %v1869_v63 = vmax.f32 %v1829_v14, 0.0  ;;  %v4720_v27 = vadd.f32 %v1871_v43, %v4555_v1 }
 0x465   : > { %v4726_v62 = vadd.f32 %v1869_v63, %v4561_v35  ;;  %v1919_v20 = vpack.c.bf16 %v4720_v27, %v4729_v2 }
 0x467   : > { %v1918_v59 = vpack.c.bf16 %v4726_v62, %v4723_v52 }
 0x469   : > { %3012 = vmatprep.mubr.bf16.mxu1 %v1918_v59 }
 0x46a   : > { %3013 = vmatmul.mubr.bf16.gmra.mxu1 %v1919_v20 }
 0x4f2   : > { %v2986_v1 = vpop.f32.mrf.mxu1 }
 0x4f3   : > { %v2034_v49 = vadd.f32 %v2986_v1, %v4738_v25 }
 0x4f4   : > { %v2025_v35 = vpop.f32.mrf.mxu1 }
 0x4f5   : > { %v2026_v11 = vadd.f32 %v4738_v25, %v2025_v35  ;;  %v2154_v51 = vmax.f32 %v2034_v49, 0.0 }
 0x4f6   : > { %v2987_v37 = vpop.f32.mrf.mxu1 }
 0x4f7   : > { %v2037_v48 = vadd.f32 %v2987_v37, %v4738_v25  ;;  %v2152_v56 = vmax.f32 %v2026_v11, 0.0  ;;  %v2186_v34 = vadd.f32 %v2154_v51, %v4590_v31 }
 0x4f8   : > { %v2028_v23 = vpop.f32.mrf.mxu1 }
 0x4f9   : > { %v2155_v18 = vmax.f32 %v2037_v48, 0.0  ;;  %v2029_v19 = vadd.f32 %v4738_v25, %v2028_v23  ;;  %v2184_v6 = vadd.f32 %v2152_v56, %v4583_v15 }
 0x4fa   : > { %v2990_v12 = vpop.f32.mrf.mxu1 }
 0x4fb   : > { %v2153_v60 = vmax.f32 %v2029_v19, 0.0  ;;  %v2187_v45 = vadd.f32 %v2155_v18, %v4580_v7  ;;  %v2050_v29 = vadd.f32 %v2990_v12, %v4738_v25 }
 0x4fc   : > { %v2041_v47 = vpop.f32.mrf.mxu1 }
 0x4fd   : > { %v2185_v42 = vadd.f32 %v2153_v60, %v4586_v13  ;;  %v2042_v39 = vadd.f32 %v4738_v25, %v2041_v47  ;;  %v2217_v8 = vpack.c.bf16 %v2187_v45, %v2186_v34  ;;  %v2158_v15 = vmax.f32 %v2050_v29, 0.0 }
 0x4fe   : > { %v2991_v17 = vpop.f32.mrf.mxu1 }
 0x4ff   : > { %v2053_v33 = vadd.f32 %v2991_v17, %v4738_v25  ;;  %v2216_v38 = vpack.c.bf16 %v2185_v42, %v2184_v6  ;;  %v2156_v14 = vmax.f32 %v2042_v39, 0.0  ;;  %v2190_v35 = vadd.f32 %v2158_v15, %v4610_v28 }
 0x500   : > { %v2044_v43 = vpop.f32.mrf.mxu1 }
 0x501   : > { %v2159_v44 = vmax.f32 %v2053_v33, 0.0  ;;  %v2045_v7 = vadd.f32 %v4738_v25, %v2044_v43  ;;  %3032 = vmatprep.mubr.bf16.mxu0 %v2216_v38  ;;  %v2188_v20 = vadd.f32 %v2156_v14, %v4603_v0 }
 0x502   : > { %v2994_v63 = vpop.f32.mrf.mxu1  ;;  %3033 = vmatmul.mubr.bf16.vlgmr.msra.gmra.mxu0 %v2217_v8 }
 0x503   : > { %v2157_v13 = vmax.f32 %v2045_v7, 0.0  ;;  %v2191_v59 = vadd.f32 %v2159_v44, %v4600_v10  ;;  %v2066_v11 = vadd.f32 %v2994_v63, %v4738_v25 }
 0x504   : > { %v2057_v31 = vpop.f32.mrf.mxu1 }
 0x505   : > { %v2189_v46 = vadd.f32 %v2157_v13, %v4606_v5  ;;  %v2058_v1 = vadd.f32 %v4738_v25, %v2057_v31  ;;  %v2219_v56 = vpack.c.bf16 %v2191_v59, %v2190_v35  ;;  %v2162_v0 = vmax.f32 %v2066_v11, 0.0 }
 0x506   : > { %v2995_v49 = vpop.f32.mrf.mxu1 }
 0x507   : > { %v2069_v37 = vadd.f32 %v2995_v49, %v4738_v25  ;;  %v2218_v48 = vpack.c.bf16 %v2189_v46, %v2188_v20  ;;  %v2160_v18 = vmax.f32 %v2058_v1, 0.0  ;;  %v2194_v6 = vadd.f32 %v2162_v0, %v4630_v32 }
 0x508   : > { %v2060_v23 = vpop.f32.mrf.mxu1 }
 0x509   : > { %v2163_v19 = vmax.f32 %v2069_v37, 0.0  ;;  %v2061_v10 = vadd.f32 %v4738_v25, %v2060_v23  ;;  %3036 = vmatprep.mubr.bf16.mxu0 %v2218_v48  ;;  %v2192_v60 = vadd.f32 %v2160_v18, %v4623_v40 }
 0x50a   : > { %v2998_v51 = vpop.f32.mrf.mxu1  ;;  %3037 = vmatmul.mubr.bf16.gmra.mxu0 %v2219_v56 }
 0x50b   : > { %v2161_v5 = vmax.f32 %v2061_v10, 0.0  ;;  %v2195_v12 = vadd.f32 %v2163_v19, %v4620_v30  ;;  %v2082_v42 = vadd.f32 %v2998_v51, %v4738_v25 }
 0x50c   : > { %v2073_v28 = vpop.f32.mrf.mxu1 }
 0x50d   : > { %v2193_v45 = vadd.f32 %v2161_v5, %v4626_v22  ;;  %v2074_v47 = vadd.f32 %v4738_v25, %v2073_v28  ;;  %v2221_v33 = vpack.c.bf16 %v2195_v12, %v2194_v6  ;;  %v2166_v40 = vmax.f32 %v2082_v42, 0.0 }
 0x50e   : > { %v2999_v39 = vpop.f32.mrf.mxu1 }
 0x50f   : > { %v2085_v34 = vadd.f32 %v2999_v39, %v4738_v25  ;;  %v2220_v29 = vpack.c.bf16 %v2193_v45, %v2192_v60  ;;  %v2164_v38 = vmax.f32 %v2074_v47, 0.0  ;;  %v2198_v63 = vadd.f32 %v2166_v40, %v4650_v4 }
 0x510   : > { %v2076_v17 = vpop.f32.mrf.mxu1 }
 0x511   : > { %v2167_v8 = vmax.f32 %v2085_v34, 0.0  ;;  %v2077_v30 = vadd.f32 %v4738_v25, %v2076_v17  ;;  %3040 = vmatprep.mubr.bf16.mxu0 %v2220_v29  ;;  %v2196_v44 = vadd.f32 %v2164_v38, %v4643_v24 }
 0x512   : > { %v3002_v43 = vpop.f32.mrf.mxu1  ;;  %3041 = vmatmul.mubr.bf16.gmra.mxu0 %v2221_v33 }
 0x513   : > { %v2165_v22 = vmax.f32 %v2077_v30, 0.0  ;;  %v2199_v14 = vadd.f32 %v2167_v8, %v4640_v58  ;;  %v2098_v13 = vadd.f32 %v3002_v43, %v4738_v25 }
 0x514   : > { %v2089_v32 = vpop.f32.mrf.mxu1 }
 0x515   : > { %v2197_v7 = vadd.f32 %v2165_v22, %v4646_v41  ;;  %v2090_v15 = vadd.f32 %v4738_v25, %v2089_v32  ;;  %v2223_v1 = vpack.c.bf16 %v2199_v14, %v2198_v63  ;;  %v2170_v24 = vmax.f32 %v2098_v13, 0.0 }
 0x516   : > { %v3003_v59 = vpop.f32.mrf.mxu1 }
 0x517   : > { %v2101_v31 = vadd.f32 %v3003_v59, %v4738_v25  ;;  %v2222_v20 = vpack.c.bf16 %v2197_v7, %v2196_v44  ;;  %v2168_v35 = vmax.f32 %v2090_v15, 0.0  ;;  %v2202_v18 = vadd.f32 %v2170_v24, %v4670_v55 }
 0x518   : > { %v2092_v46 = vpop.f32.mrf.mxu1 }
 0x519   : > { %v2171_v11 = vmax.f32 %v2101_v31, 0.0  ;;  %v2093_v58 = vadd.f32 %v4738_v25, %v2092_v46  ;;  %3044 = vmatprep.mubr.bf16.mxu0 %v2222_v20  ;;  %v2200_v48 = vadd.f32 %v2168_v35, %v4663_v16 }
 0x51a   : > { %v3006_v49 = vpop.f32.mrf.mxu1  ;;  %3045 = vmatmul.mubr.bf16.gmra.mxu0 %v2223_v1 }
 0x51b   : > { %v2169_v41 = vmax.f32 %v2093_v58, 0.0  ;;  %v2203_v37 = vadd.f32 %v2171_v11, %v4660_v26  ;;  %v2114_v19 = vadd.f32 %v3006_v49, %v4738_v25 }
 0x51c   : > { %v2105_v4 = vpop.f32.mrf.mxu1 }
 0x51d   : > { %v2201_v23 = vadd.f32 %v2169_v41, %v4666_v53  ;;  %v2106_v56 = vadd.f32 %v4738_v25, %v2105_v4  ;;  %v2225_v12 = vpack.c.bf16 %v2203_v37, %v2202_v18  ;;  %v2174_v16 = vmax.f32 %v2114_v19, 0.0 }
 0x51e   : > { %v3007_v10 = vpop.f32.mrf.mxu1 }
 0x51f   : > { %v2117_v0 = vadd.f32 %v3007_v10, %v4738_v25  ;;  %v2224_v51 = vpack.c.bf16 %v2201_v23, %v2200_v48  ;;  %v2172_v28 = vmax.f32 %v2106_v56, 0.0  ;;  %v2206_v34 = vadd.f32 %v2174_v16, %v4690_v3 }
 0x520   : > { %v2108_v5 = vpop.f32.mrf.mxu1 }
 0x521   : > { %v2175_v60 = vmax.f32 %v2117_v0, 0.0  ;;  %v2109_v26 = vadd.f32 %v4738_v25, %v2108_v5  ;;  %3048 = vmatprep.mubr.bf16.mxu0 %v2224_v51  ;;  %v2204_v6 = vadd.f32 %v2172_v28, %v4683_v57 }
 0x522   : > { %v3010_v45 = vpop.f32.mrf.mxu1  ;;  %3049 = vmatmul.mubr.bf16.gmra.mxu0 %v2225_v12 }
 0x523   : > { %v2173_v53 = vmax.f32 %v2109_v26, 0.0  ;;  %v2207_v47 = vadd.f32 %v2175_v60, %v4680_v9  ;;  %v2130_v29 = vadd.f32 %v3010_v45, %v4738_v25 }
 0x524   : > { %v2121_v55 = vpop.f32.mrf.mxu1 }
 0x525   : > { %v2205_v42 = vadd.f32 %v2173_v53, %v4686_v50  ;;  %v2122_v39 = vadd.f32 %v4738_v25, %v2121_v55  ;;  %v2227_v30 = vpack.c.bf16 %v2207_v47, %v2206_v34  ;;  %v2178_v57 = vmax.f32 %v2130_v29, 0.0 }
 0x526   : > { %v3011_v17 = vpop.f32.mrf.mxu1 }
 0x527   : > { %v2133_v33 = vadd.f32 %v3011_v17, %v4738_v25  ;;  %v2226_v38 = vpack.c.bf16 %v2205_v42, %v2204_v6  ;;  %v2176_v40 = vmax.f32 %v2122_v39, 0.0  ;;  %v2210_v15 = vadd.f32 %v2178_v57, %v4710_v61 }
 0x528   : > { %v2124_v8 = vpop.f32.mrf.mxu1 }
 0x529   : > { %v2179_v43 = vmax.f32 %v2133_v33, 0.0  ;;  %v2125_v9 = vadd.f32 %v4738_v25, %v2124_v8  ;;  %3052 = vmatprep.mubr.bf16.mxu0 %v2226_v38  ;;  %v2208_v32 = vadd.f32 %v2176_v40, %v4703_v21 }
 0x52a   : > { %v3014_v22 = vpop.f32.mrf.mxu1  ;;  %3053 = vmatmul.mubr.bf16.gmra.mxu0 %v2227_v30 }
 0x52b   : > { %v2177_v50 = vmax.f32 %v2125_v9, 0.0  ;;  %v2211_v14 = vadd.f32 %v2179_v43, %v4700_v54  ;;  %v2146_v63 = vadd.f32 %v3014_v22, %v4738_v25 }
 0x52c   : > { %v2137_v3 = vpop.f32.mrf.mxu1 }
 0x52d   : > { %v2209_v44 = vadd.f32 %v2177_v50, %v4706_v36  ;;  %v2138_v7 = vadd.f32 %v4738_v25, %v2137_v3  ;;  %v2229_v46 = vpack.c.bf16 %v2211_v14, %v2210_v15  ;;  %v2182_v21 = vmax.f32 %v2146_v63, 0.0 }
 0x52e   : > { %v3015_v13 = vpop.f32.mrf.mxu1 }
 0x52f   : > { %v2149_v59 = vadd.f32 %v3015_v13, %v4738_v25  ;;  %v2228_v31 = vpack.c.bf16 %v2209_v44, %v2208_v32  ;;  %v2180_v1 = vmax.f32 %v2138_v7, 0.0  ;;  %v2214_v24 = vadd.f32 %v2182_v21, %v4729_v2 }
 0x530   : > { %v2140_v20 = vpop.f32.mrf.mxu1 }
 0x531   : > { %v2183_v35 = vmax.f32 %v2149_v59, 0.0  ;;  %v2141_v54 = vadd.f32 %v4738_v25, %v2140_v20  ;;  %3056 = vmatprep.mubr.bf16.mxu0 %v2228_v31  ;;  %v2212_v61 = vadd.f32 %v2180_v1, %v4723_v52  ;;  %v4807_v25 = vld [vmem:[%s4939_s12] ss:$0 sm:$0xff] }
 0x532   : > { %3057 = vmatmul.mubr.bf16.gmra.mxu0 %v2229_v46 }
 0x533   : > { %v2181_v36 = vmax.f32 %v2141_v54, 0.0  ;;  %v2215_v11 = vadd.f32 %v2183_v35, %v4720_v27 }
 0x535   : > { %v2213_v58 = vadd.f32 %v2181_v36, %v4726_v62  ;;  %v2231_v41 = vpack.c.bf16 %v2215_v11, %v2214_v24 }
 0x537   : > { %v2230_v49 = vpack.c.bf16 %v2213_v58, %v2212_v61 }
 0x539   : > { %3060 = vmatprep.mubr.bf16.mxu0 %v2230_v49 }
 0x53a   : > { %3061 = vmatmul.mubr.bf16.gmra.mxu0 %v2231_v41 }
 0x5c2   : > { %v3034_v37 = vpop.f32.mrf.mxu0 }
 0x5c3   : > { %v2346_v4 = vadd.f32 %v3034_v37, %v4807_v25 }
 0x5c4   : > { %v2337_v48 = vpop.f32.mrf.mxu0 }
 0x5c5   : > { %2466 = vst [vmem:[%s4812_s9 + $0x10] sm:$0xff] %v2346_v4  ;;  %v2338_v27 = vadd.f32 %v4807_v25, %v2337_v48 }
 0x5c6   : > { %v3035_v52 = vpop.f32.mrf.mxu0 }
 0x5c7   : > { %2464 = vst [vmem:[%s4812_s9] sm:$0xff] %v2338_v27  ;;  %v2349_v62 = vadd.f32 %v3035_v52, %v4807_v25 }
 0x5c8   : > { %v2340_v2 = vpop.f32.mrf.mxu0 }
 0x5c9   : > { %2467 = vst [vmem:[%s4812_s9 + $0x18] sm:$0xff] %v2349_v62  ;;  %v2341_v23 = vadd.f32 %v4807_v25, %v2340_v2 }
 0x5ca   : > { %v3038_v56 = vpop.f32.mrf.mxu0 }
 0x5cb   : > { %2465 = vst [vmem:[%s4812_s9 + $0x8] sm:$0xff] %v2341_v23  ;;  %v2362_v18 = vadd.f32 %v3038_v56, %v4807_v25 }
 0x5cc   : > { %v2353_v19 = vpop.f32.mrf.mxu0 }
 0x5cd   : > { %2470 = vst [vmem:[%s4812_s9 + $0x30] sm:$0xff] %v2362_v18  ;;  %v2354_v10 = vadd.f32 %v4807_v25, %v2353_v19 }
 0x5ce   : > { %v3039_v0 = vpop.f32.mrf.mxu0 }
 0x5cf   : > { %2468 = vst [vmem:[%s4812_s9 + $0x20] sm:$0xff] %v2354_v10  ;;  %v2365_v51 = vadd.f32 %v3039_v0, %v4807_v25 }
 0x5d0   : > { %v2356_v5 = vpop.f32.mrf.mxu0 }
 0x5d1   : > { %2471 = vst [vmem:[%s4812_s9 + $0x38] sm:$0xff] %v2365_v51  ;;  %v2357_v12 = vadd.f32 %v4807_v25, %v2356_v5 }
 0x5d2   : > { %v3042_v28 = vpop.f32.mrf.mxu0 }
 0x5d3   : > { %2469 = vst [vmem:[%s4812_s9 + $0x28] sm:$0xff] %v2357_v12  ;;  %v2378_v60 = vadd.f32 %v3042_v28, %v4807_v25 }
 0x5d4   : > { %v2369_v26 = vpop.f32.mrf.mxu0 }
 0x5d5   : > { %2474 = vst [vmem:[%s4812_s9 + $0x50] sm:$0xff] %v2378_v60  ;;  %v2370_v16 = vadd.f32 %v4807_v25, %v2369_v26 }
 0x5d6   : > { %v3043_v45 = vpop.f32.mrf.mxu0 }
 0x5d7   : > { %2472 = vst [vmem:[%s4812_s9 + $0x40] sm:$0xff] %v2370_v16  ;;  %v2381_v53 = vadd.f32 %v3043_v45, %v4807_v25 }
 0x5d8   : > { %v2372_v47 = vpop.f32.mrf.mxu0 }
 0x5d9   : > { %2475 = vst [vmem:[%s4812_s9 + $0x58] sm:$0xff] %v2381_v53  ;;  %v2373_v55 = vadd.f32 %v4807_v25, %v2372_v47 }
 0x5da   : > { %v3046_v6 = vpop.f32.mrf.mxu0 }
 0x5db   : > { %2473 = vst [vmem:[%s4812_s9 + $0x48] sm:$0xff] %v2373_v55  ;;  %v2394_v42 = vadd.f32 %v3046_v6, %v4807_v25 }
 0x5dc   : > { %v2385_v39 = vpop.f32.mrf.mxu0 }
 0x5dd   : > { %2478 = vst [vmem:[%s4812_s9 + $0x70] sm:$0xff] %v2394_v42  ;;  %v2386_v34 = vadd.f32 %v4807_v25, %v2385_v39 }
 0x5de   : > { %v3047_v29 = vpop.f32.mrf.mxu0 }
 0x5df   : > { %2476 = vst [vmem:[%s4812_s9 + $0x60] sm:$0xff] %v2386_v34  ;;  %v2397_v17 = vadd.f32 %v3047_v29, %v4807_v25 }
 0x5e0   : > { %v2388_v33 = vpop.f32.mrf.mxu0 }
 0x5e1   : > { %2479 = vst [vmem:[%s4812_s9 + $0x78] sm:$0xff] %v2397_v17  ;;  %v2389_v38 = vadd.f32 %v4807_v25, %v2388_v33 }
 0x5e2   : > { %v3050_v8 = vpop.f32.mrf.mxu0 }
 0x5e3   : > { %2477 = vst [vmem:[%s4812_s9 + $0x68] sm:$0xff] %v2389_v38  ;;  %v2410_v30 = vadd.f32 %v3050_v8, %v4807_v25 }
 0x5e4   : > { %v2401_v40 = vpop.f32.mrf.mxu0 }
 0x5e5   : > { %2482 = vst [vmem:[%s4812_s9 + $0x90] sm:$0xff] %v2410_v30  ;;  %v2402_v43 = vadd.f32 %v4807_v25, %v2401_v40 }
 0x5e6   : > { %v3051_v9 = vpop.f32.mrf.mxu0 }
 0x5e7   : > { %2480 = vst [vmem:[%s4812_s9 + $0x80] sm:$0xff] %v2402_v43  ;;  %v2413_v57 = vadd.f32 %v3051_v9, %v4807_v25 }
 0x5e8   : > { %v2404_v22 = vpop.f32.mrf.mxu0 }
 0x5e9   : > { %2483 = vst [vmem:[%s4812_s9 + $0x98] sm:$0xff] %v2413_v57  ;;  %v2405_v50 = vadd.f32 %v4807_v25, %v2404_v22 }
 0x5ea   : > { %v3054_v14 = vpop.f32.mrf.mxu0 }
 0x5eb   : > { %2481 = vst [vmem:[%s4812_s9 + $0x88] sm:$0xff] %v2405_v50  ;;  %v2426_v3 = vadd.f32 %v3054_v14, %v4807_v25 }
 0x5ec   : > { %v2417_v32 = vpop.f32.mrf.mxu0 }
 0x5ed   : > { %2486 = vst [vmem:[%s4812_s9 + $0xb0] sm:$0xff] %v2426_v3  ;;  %v2418_v44 = vadd.f32 %v4807_v25, %v2417_v32 }
 0x5ee   : > { %v3055_v7 = vpop.f32.mrf.mxu0 }
 0x5ef   : > { %2484 = vst [vmem:[%s4812_s9 + $0xa0] sm:$0xff] %v2418_v44  ;;  %v2429_v15 = vadd.f32 %v3055_v7, %v4807_v25 }
 0x5f0   : > { %v2420_v63 = vpop.f32.mrf.mxu0 }
 0x5f1   : > { %2487 = vst [vmem:[%s4812_s9 + $0xb8] sm:$0xff] %v2429_v15  ;;  %v2421_v13 = vadd.f32 %v4807_v25, %v2420_v63 }
 0x5f2   : > { %v3058_v59 = vpop.f32.mrf.mxu0 }
 0x5f3   : > { %2485 = vst [vmem:[%s4812_s9 + $0xa8] sm:$0xff] %v2421_v13  ;;  %v2442_v31 = vadd.f32 %v3058_v59, %v4807_v25 }
 0x5f4   : > { %v2433_v20 = vpop.f32.mrf.mxu0 }
 0x5f5   : > { %2490 = vst [vmem:[%s4812_s9 + $0xd0] sm:$0xff] %v2442_v31  ;;  %v2434_v46 = vadd.f32 %v4807_v25, %v2433_v20 }
 0x5f6   : > { %v3059_v1 = vpop.f32.mrf.mxu0 }
 0x5f7   : > { %2488 = vst [vmem:[%s4812_s9 + $0xc0] sm:$0xff] %v2434_v46  ;;  %v2445_v35 = vadd.f32 %v3059_v1, %v4807_v25 }
 0x5f8   : > { %v2436_v54 = vpop.f32.mrf.mxu0 }
 0x5f9   : > { %2491 = vst [vmem:[%s4812_s9 + $0xd8] sm:$0xff] %v2445_v35  ;;  %v2437_v21 = vadd.f32 %v4807_v25, %v2436_v54 }
 0x5fa   : > { %v3062_v36 = vpop.f32.mrf.mxu0 }
 0x5fb   : > { %2489 = vst [vmem:[%s4812_s9 + $0xc8] sm:$0xff] %v2437_v21  ;;  %v2458_v11 = vadd.f32 %v3062_v36, %v4807_v25 }
 0x5fc   : > { %v2449_v61 = vpop.f32.mrf.mxu0 }
 0x5fd   : > { %2494 = vst [vmem:[%s4812_s9 + $0xf0] sm:$0xff] %v2458_v11  ;;  %v2450_v58 = vadd.f32 %v4807_v25, %v2449_v61 }
 0x5fe   : > { %v3063_v24 = vpop.f32.mrf.mxu0 }
 0x5ff   : > { %2492 = vst [vmem:[%s4812_s9 + $0xe0] sm:$0xff] %v2450_v58  ;;  %v2461_v49 = vadd.f32 %v3063_v24, %v4807_v25 }
 0x600   : > { %v2452_v41 = vpop.f32.mrf.mxu0 }
 0x601   : > { %2495 = vst [vmem:[%s4812_s9 + $0xf8] sm:$0xff] %v2461_v49  ;;  %v2453_v37 = vadd.f32 %v4807_v25, %v2452_v41 }
 0x603   : > { %2493 = vst [vmem:[%s4812_s9 + $0xe8] sm:$0xff] %v2453_v37 }
 0x604   : > { %3458 = shalt.err (!%p3455_p3)
}
 0x605   : > { %s3459_s29 = scalar_lea.hbm %s4879_s18, 4096  ;;  %s3463_s7 = scalar_lea.hbm %s4940_s13, 8192 }
 0x606   : > { %p3460_p4 = scmp.ne.s32.totalorder %s4879_s18, %s3459_s29  ;;  %p3464_p2 = scmp.lt.s32.totalorder %s4879_s18, %s4940_s13 }
 0x607   : > { %p3465_p7 = scmp.lt.s32.totalorder %s3463_s7, %s3459_s29 }
 0x608   : > { %p3461_p12 = pnand %p3460_p4, %p4973_p11 }
 0x609   : > { %p3466_p8 = por %p3465_p7, %p3464_p2 }
 0x60a   : > { %p3462_p6 = pneg %p3461_p12 }
 0x60c   : > { %p3467_p10 = pnand %p3466_p8, %p3462_p6 }
 0x60e   : > { %3470 = shalt.err (!%p3467_p10)
}
 0x60f   : > { %s3534_s16 = smov 128   ;;  %s3535_s30 = smov 8  }
 0x610   : > { %3102 = dma.vmem_to_hbm [thread:$0]  (%p4973_p11), %s4881_s15, 4096, %s4879_s18, %s2497_s14, %s3534_s16, %s3534_s16, %s3535_s30  }
 0x611 PF: > { %s2525_s22 = sand.u32 1, %s3509_s25   ;;  %p4974_p0 = scmp.ne.s32.totalorder %s4963_s24, 0 }
 0x612   : > { %p4975_p13 = scmp.ge.s32.totalorder %s3521_s28, 2  ;;  %s2526_s23 = scalar_lea.sflag [#allocation4], %s2525_s22 }
 0x614   : > { %p3125_p5 = pnand %p4975_p13, %p4974_p0 }
 0x616   : > { %p3126_p9 = pneg %p3125_p5 }
 0x618   : > { %3504 = dma.done.wait (%p3126_p9), %s2526_s23, 4096  }
 0x619   : > { %3506 = vsyncadd (%p3126_p9), %s2526_s23, 4294963200  ;;  %s4976_s17 = sld [smem:[#allocation19_spill]]  ;;  %p29_p1 = scmp.ge.s32.totalorder %s3717_s21, 4  }
 0x61a   : > { %s4977_s27 = sld [smem:[#allocation20_spill]]  ;;  %s4978_s25 = smov %s3513_s26 }
 0x61b   : > { %s4980_s28 = smov %s3717_s21  ;;  %31 = sbr.rel (!%p29_p1) target bundleno = 14 (0xe), region = 137 }
 0x61f   : > { %s4979_s26 = smov %s4976_s17 }
 0x620   :  { %2531 = vsyncpa [#allocation3], 1 }
 0x621   :  { %2533 = vsyncpa [#allocation3 + $0x1], 1 }
 0x622   :  { %2534 = vsyncpa [#allocation6], 1 }
 0x623   :  { %2535 = vsyncpa [#allocation9], 1 }
 0x624   :  { %2536 = vsyncpa [#allocation12], 1 }
 0x625   :  { %2537 = vsyncpa [#allocation4], 1 }
 0x626   :  { %2539 = vsyncpa [#allocation4 + $0x1], 1 }

</bundles_post_ra>
